<compile_context>
chip_gen: v7x
topology: tpu7x:2x2x1
jax: 0.10.0
libtpu: 0.0.40
codegen_flags: <defaults>
</compile_context>

<pallas_src>
import functools

import jax
import jax.numpy as jnp
from jax.experimental import pallas as pl
from jax.experimental.pallas import tpu as pltpu


# ---------------------------------------------------------------------------
# Fused Bottleneck kernel.
# Activations live as (C, H*Wp) with the spatial dims flattened using a padded
# row stride Wp (>= W+2); a 3x3 tap (dy, dx) is then a contiguous lane slice at
# offset dy*Wp + dx, so the conv is 9 shifted (Cout,Cin)@(Cin,L) matmuls.
# ---------------------------------------------------------------------------
def _make_bottleneck_kernel(H, Wp, add_residual):
    L = H * Wp                                                   # flattened output length
    offs = tuple(dy * Wp + dx for dy in range(3) for dx in range(3))  # 9 taps
    base = Wp + 1                                                # flat offset of pixel (0, 0)

    def silu(v):
        # SiLU = v * sigmoid(v); exp + approximate reciprocal both run on the EUP.
        return v * pl.reciprocal(1.0 + jnp.exp(-v), approx=True)

    def conv3x3(src_bf16, w_ref, b_ref):
        # src_bf16: (Cin, Lp) bf16 padded image; w_ref: (9, Cout, Cin) bf16 taps.
        cout = w_ref.shape[1]
        acc = jnp.zeros((cout, L), jnp.float32)
        for k, off in enumerate(offs):                           # unrolled: LLO-visible
            acc = acc + jnp.dot(w_ref[k], src_bf16[:, off:off + L],
                                preferred_element_type=jnp.float32)
        return silu(acc + b_ref[...])                            # folded-BN bias

    def kernel(x_ref, w1_ref, b1_ref, w2_ref, b2_ref, mask_ref, o_ref, hpad_ref):
        xp = x_ref[0]                                 # (C1, Lp) fp32 padded image
        xp_bf = xp.astype(jnp.bfloat16)               # cast once, reused by all 9 taps
        # ---- cv1: 3x3 conv (+folded BN) + SiLU --------------------------------
        h = conv3x3(xp_bf, w1_ref, b1_ref)            # (C_, L) fp32
        # ---- re-pad h in a bf16 VMEM scratch; junk (pad) columns masked to 0 --
        hpad_ref[...] = jnp.zeros_like(hpad_ref)
        hpad_ref[:, base:base + L] = (h * mask_ref[...]).astype(hpad_ref.dtype)
        # ---- cv2: 3x3 conv (+folded BN) + SiLU (+ shortcut) --------------------
        y = conv3x3(hpad_ref[...], w2_ref, b2_ref)    # (C2, L) fp32
        if add_residual:
            y = y + xp[:, base:base + L]              # residual in fp32
        o_ref[0] = y.astype(o_ref.dtype)

    return kernel


def _bottleneck_pallas(xpad_flat, w1, b1, w2, b2, mask, *, H, Wp, add_residual):
    N, C1, Lp = xpad_flat.shape
    C_ = w1.shape[1]
    C2 = w2.shape[1]
    L = H * Wp
    kernel = _make_bottleneck_kernel(H, Wp, add_residual)
    return pl.pallas_call(
        kernel,
        out_shape=jax.ShapeDtypeStruct((N, C2, L), jnp.float32),
        grid=(N,),
        in_specs=[
            pl.BlockSpec((1, C1, Lp), lambda i: (i, 0, 0)),   # padded image i (fp32)
            pl.BlockSpec((9, C_, C1), lambda i: (0, 0, 0)),   # cv1 taps (bf16)
            pl.BlockSpec((C_, 1), lambda i: (0, 0)),          # cv1 folded-BN bias
            pl.BlockSpec((9, C2, C_), lambda i: (0, 0, 0)),   # cv2 taps (bf16)
            pl.BlockSpec((C2, 1), lambda i: (0, 0)),          # cv2 folded-BN bias
            pl.BlockSpec((1, L), lambda i: (0, 0)),           # valid-column mask
        ],
        out_specs=pl.BlockSpec((1, C2, L), lambda i: (i, 0, 0)),
        scratch_shapes=[pltpu.VMEM((C_, Lp), jnp.bfloat16)],  # padded h, VMEM-resident
        compiler_params=pltpu.CompilerParams(
            dimension_semantics=("parallel",)),
    )(xpad_flat, w1, b1, w2, b2, mask)


# ---------------------------------------------------------------------------
# Host-side wrapper (NCHW in, NCHW out)
# ---------------------------------------------------------------------------
def _padded_row_stride(H, W):
    """Smallest row stride >= W+2 with H*Wp a multiple of 128 (lane-dense,
    unmasked stores); falls back to W+2 if that would waste too many lanes."""
    for wp in range(W + 2, W + 2 + 128):
        if (H * wp) % 128 == 0 and wp <= 2 * (W + 2):
            return wp
    return W + 2


def bottleneck_forward(x_nchw, params, shortcut=True):
    """Ultralytics Bottleneck forward. x_nchw: (N, C1, H, W) float32."""
    N, C1, H, W = x_nchw.shape
    w1, b1 = params["cv1_w"], params["cv1_b"]
    w2, b2 = params["cv2_w"], params["cv2_b"]
    C2 = w2.shape[1]
    add_residual = bool(shortcut) and (C1 == C2)

    Wp = _padded_row_stride(H, W)
    L = H * Wp
    # zero-pad: 1 row top, 2 rows bottom (slack for bottom taps of junk cols),
    # 1 col left, Wp-W-1 cols right; then flatten the spatial dims.
    xpad = jnp.pad(x_nchw, ((0, 0), (0, 0), (1, 2), (1, Wp - W - 1)))
    xpad = xpad.reshape(N, C1, (H + 3) * Wp)
    # mask of "real" columns (w < W) in the flattened padded-stride layout
    mask = (jnp.arange(L, dtype=jnp.int32) % Wp < W).astype(jnp.float32)
    mask = mask.reshape(1, L)

    out_flat = _bottleneck_pallas(xpad, w1, b1, w2, b2, mask,
                                  H=H, Wp=Wp, add_residual=add_residual)
    return out_flat.reshape(N, C2, H, Wp)[:, :, :, :W]     # drop junk columns


# ---------------------------------------------------------------------------
# Deterministic parameters: Conv2d weight with eval-mode BatchNorm folded in.
# Kernel weight layout: (9, Cout, Cin) bf16, tap index = dy*3 + dx.
# ---------------------------------------------------------------------------
def make_conv3x3_params(key, cin, cout):
    k1, k2, k3, k4, k5 = jax.random.split(key, 5)
    fan_in = cin * 9
    w = jax.random.normal(k1, (cout, cin, 3, 3), jnp.float32) / jnp.sqrt(float(fan_in))
    gamma = jax.random.uniform(k2, (cout,), minval=0.5, maxval=1.5)
    beta = 0.1 * jax.random.normal(k3, (cout,))
    mean = 0.1 * jax.random.normal(k4, (cout,))
    var = jax.random.uniform(k5, (cout,), minval=0.5, maxval=1.5)
    eps = 1e-3                                            # ultralytics BatchNorm2d eps
    scale = gamma / jnp.sqrt(var + eps)
    w_eff = w * scale[:, None, None, None]                # fold BN scale into weights
    b_eff = beta - mean * scale                           # folded BN bias
    w_taps = jnp.transpose(w_eff, (2, 3, 0, 1)).reshape(9, cout, cin).astype(jnp.bfloat16)
    return w_taps, b_eff.reshape(cout, 1).astype(jnp.float32)


def make_bottleneck_params(key, c1, c2, e=0.5):
    c_ = int(c2 * e)
    k_cv1, k_cv2 = jax.random.split(key)
    w1, b1 = make_conv3x3_params(k_cv1, c1, c_)
    w2, b2 = make_conv3x3_params(k_cv2, c_, c2)
    # only array leaves (no python ints) so nothing becomes a tracer used in a
    # static slice under jit.
    return {"cv1_w": w1, "cv1_b": b1, "cv2_w": w2, "cv2_b": b2}


# ---------------------------------------------------------------------------
# Pure-JAX fp32 reference (uses the same bf16-rounded folded weights)
# ---------------------------------------------------------------------------
def bottleneck_reference(x, params, shortcut=True):
    def conv_bn_silu(v, w_taps, b):
        _, cout, cin = w_taps.shape
        w = jnp.transpose(w_taps.astype(jnp.float32).reshape(3, 3, cout, cin),
                          (2, 3, 0, 1))                   # (cout, cin, 3, 3)
        y = jax.lax.conv_general_dilated(
            v, w, window_strides=(1, 1), padding=((1, 1), (1, 1)),
            dimension_numbers=("NCHW", "OIHW", "NCHW"),
            precision=jax.lax.Precision.HIGHEST)
        y = y + b.reshape(1, -1, 1, 1)
        return y * jax.nn.sigmoid(y)

    h = conv_bn_silu(x, params["cv1_w"], params["cv1_b"])
    y = conv_bn_silu(h, params["cv2_w"], params["cv2_b"])
    if shortcut and x.shape[1] == y.shape[1]:
        return x + y
    return y


if __name__ == "__main__":
    key = jax.random.PRNGKey(0)
    k_params, k_x = jax.random.split(key)

    # Bottleneck(c1=8, c2=8, shortcut=True, g=1, k=(3, 3), e=0.5) on (2, 8, 16, 16)
    c1, c2, shortcut = 8, 8, True
    params = make_bottleneck_params(k_params, c1, c2, e=0.5)
    x = jax.random.normal(k_x, (2, c1, 16, 16), jnp.float32)

    fwd = jax.jit(functools.partial(bottleneck_forward, shortcut=shortcut))
    out = fwd(x, params)
    jax.block_until_ready(out)

    assert out.shape == (2, c2, 16, 16), out.shape
    assert out.dtype == jnp.float32

    # loose numerical sanity check vs fp32 reference (kernel uses bf16 matmuls
    # and an approximate reciprocal, so allow a generous tolerance)
    ref = bottleneck_reference(x, params, shortcut=shortcut)
    max_err = float(jnp.max(jnp.abs(out - ref)))
    assert max_err < 0.35, max_err

    print("KERNEL_OK")
</pallas_src>

<mosaic_0001>
module attributes {stable_mosaic.version = 11 : i64} {
  func.func @kernel(%arg0: i32, %arg1: memref<1x8x456xf32, #tpu.memory_space<vmem>>, %arg2: memref<9x4x8xbf16, #tpu.memory_space<vmem>>, %arg3: memref<4x1xf32, #tpu.memory_space<vmem>>, %arg4: memref<9x8x4xbf16, #tpu.memory_space<vmem>>, %arg5: memref<8x1xf32, #tpu.memory_space<vmem>>, %arg6: memref<1x384xf32, #tpu.memory_space<vmem>>, %arg7: memref<1x8x384xf32, #tpu.memory_space<vmem>>, %arg8: memref<4x456xbf16, #tpu.memory_space<vmem>>) attributes {dimension_semantics = [#tpu.dimension_semantics<parallel>], iteration_bounds = array<i64: 2>, scalar_prefetch = 0 : i64, scratch_operands = 1 : i64, tpu.core_type = #tpu.core_type<tc>, window_params = [{transform_indices = @transform_0, window_bounds = array<i64: 1, 8, 456>}, {pipeline_mode = #tpu.pipeline_mode<synchronous>, transform_indices = @transform_1, window_bounds = array<i64: 9, 4, 8>}, {pipeline_mode = #tpu.pipeline_mode<synchronous>, transform_indices = @transform_2, window_bounds = array<i64: 4, 1>}, {pipeline_mode = #tpu.pipeline_mode<synchronous>, transform_indices = @transform_3, window_bounds = array<i64: 9, 8, 4>}, {pipeline_mode = #tpu.pipeline_mode<synchronous>, transform_indices = @transform_4, window_bounds = array<i64: 8, 1>}, {pipeline_mode = #tpu.pipeline_mode<synchronous>, transform_indices = @transform_5, window_bounds = array<i64: 1, 384>}, {transform_indices = @transform_6, window_bounds = array<i64: 1, 8, 384>}]} {
    %c0 = arith.constant 0 : index
    %c0_0 = arith.constant 0 : index
    %c0_1 = arith.constant 0 : index
    %0 = vector.load %arg1[%c0, %c0_0, %c0_1] : memref<1x8x456xf32, #tpu.memory_space<vmem>>, vector<1x8x456xf32>
    %1 = vector.shape_cast %0 : vector<1x8x456xf32> to vector<8x456xf32>
    %2 = arith.truncf %1 : vector<8x456xf32> to vector<8x456xbf16>
    %cst = arith.constant 0.000000e+00 : f32
    %3 = vector.broadcast %cst : f32 to vector<4x384xf32>
    %c0_2 = arith.constant 0 : index
    %c0_3 = arith.constant 0 : index
    %c0_4 = arith.constant 0 : index
    %4 = vector.load %arg2[%c0_2, %c0_3, %c0_4] : memref<9x4x8xbf16, #tpu.memory_space<vmem>>, vector<1x4x8xbf16>
    %5 = vector.shape_cast %4 : vector<1x4x8xbf16> to vector<4x8xbf16>
    %6 = vector.extract_strided_slice %2 {offsets = [0, 0], sizes = [8, 384], strides = [1, 1]} : vector<8x456xbf16> to vector<8x384xbf16>
    %cst_5 = arith.constant dense<0.000000e+00> : vector<4x384xf32>
    %7 = tpu.matmul %5, %6, %cst_5 {dimension_numbers = #tpu.dot_dimension_numbers<[1], [0], [0], [1], [0, 0, 1, 1], [], []>} : vector<4x8xbf16>, vector<8x384xbf16>, vector<4x384xf32> -> vector<4x384xf32>
    %8 = arith.addf %3, %7 : vector<4x384xf32>
    %c1 = arith.constant 1 : index
    %c0_6 = arith.constant 0 : index
    %c0_7 = arith.constant 0 : index
    %9 = vector.load %arg2[%c1, %c0_6, %c0_7] : memref<9x4x8xbf16, #tpu.memory_space<vmem>>, vector<1x4x8xbf16>
    %10 = vector.shape_cast %9 : vector<1x4x8xbf16> to vector<4x8xbf16>
    %11 = vector.extract_strided_slice %2 {offsets = [0, 1], sizes = [8, 384], strides = [1, 1]} : vector<8x456xbf16> to vector<8x384xbf16>
    %cst_8 = arith.constant dense<0.000000e+00> : vector<4x384xf32>
    %12 = tpu.matmul %10, %11, %cst_8 {dimension_numbers = #tpu.dot_dimension_numbers<[1], [0], [0], [1], [0, 0, 1, 1], [], []>} : vector<4x8xbf16>, vector<8x384xbf16>, vector<4x384xf32> -> vector<4x384xf32>
    %13 = arith.addf %8, %12 : vector<4x384xf32>
    %c2 = arith.constant 2 : index
    %c0_9 = arith.constant 0 : index
    %c0_10 = arith.constant 0 : index
    %14 = vector.load %arg2[%c2, %c0_9, %c0_10] : memref<9x4x8xbf16, #tpu.memory_space<vmem>>, vector<1x4x8xbf16>
    %15 = vector.shape_cast %14 : vector<1x4x8xbf16> to vector<4x8xbf16>
    %16 = vector.extract_strided_slice %2 {offsets = [0, 2], sizes = [8, 384], strides = [1, 1]} : vector<8x456xbf16> to vector<8x384xbf16>
    %cst_11 = arith.constant dense<0.000000e+00> : vector<4x384xf32>
    %17 = tpu.matmul %15, %16, %cst_11 {dimension_numbers = #tpu.dot_dimension_numbers<[1], [0], [0], [1], [0, 0, 1, 1], [], []>} : vector<4x8xbf16>, vector<8x384xbf16>, vector<4x384xf32> -> vector<4x384xf32>
    %18 = arith.addf %13, %17 : vector<4x384xf32>
    %c3 = arith.constant 3 : index
    %c0_12 = arith.constant 0 : index
    %c0_13 = arith.constant 0 : index
    %19 = vector.load %arg2[%c3, %c0_12, %c0_13] : memref<9x4x8xbf16, #tpu.memory_space<vmem>>, vector<1x4x8xbf16>
    %20 = vector.shape_cast %19 : vector<1x4x8xbf16> to vector<4x8xbf16>
    %21 = vector.extract_strided_slice %2 {offsets = [0, 24], sizes = [8, 384], strides = [1, 1]} : vector<8x456xbf16> to vector<8x384xbf16>
    %cst_14 = arith.constant dense<0.000000e+00> : vector<4x384xf32>
    %22 = tpu.matmul %20, %21, %cst_14 {dimension_numbers = #tpu.dot_dimension_numbers<[1], [0], [0], [1], [0, 0, 1, 1], [], []>} : vector<4x8xbf16>, vector<8x384xbf16>, vector<4x384xf32> -> vector<4x384xf32>
    %23 = arith.addf %18, %22 : vector<4x384xf32>
    %c4 = arith.constant 4 : index
    %c0_15 = arith.constant 0 : index
    %c0_16 = arith.constant 0 : index
    %24 = vector.load %arg2[%c4, %c0_15, %c0_16] : memref<9x4x8xbf16, #tpu.memory_space<vmem>>, vector<1x4x8xbf16>
    %25 = vector.shape_cast %24 : vector<1x4x8xbf16> to vector<4x8xbf16>
    %26 = vector.extract_strided_slice %2 {offsets = [0, 25], sizes = [8, 384], strides = [1, 1]} : vector<8x456xbf16> to vector<8x384xbf16>
    %cst_17 = arith.constant dense<0.000000e+00> : vector<4x384xf32>
    %27 = tpu.matmul %25, %26, %cst_17 {dimension_numbers = #tpu.dot_dimension_numbers<[1], [0], [0], [1], [0, 0, 1, 1], [], []>} : vector<4x8xbf16>, vector<8x384xbf16>, vector<4x384xf32> -> vector<4x384xf32>
    %28 = arith.addf %23, %27 : vector<4x384xf32>
    %c5 = arith.constant 5 : index
    %c0_18 = arith.constant 0 : index
    %c0_19 = arith.constant 0 : index
    %29 = vector.load %arg2[%c5, %c0_18, %c0_19] : memref<9x4x8xbf16, #tpu.memory_space<vmem>>, vector<1x4x8xbf16>
    %30 = vector.shape_cast %29 : vector<1x4x8xbf16> to vector<4x8xbf16>
    %31 = vector.extract_strided_slice %2 {offsets = [0, 26], sizes = [8, 384], strides = [1, 1]} : vector<8x456xbf16> to vector<8x384xbf16>
    %cst_20 = arith.constant dense<0.000000e+00> : vector<4x384xf32>
    %32 = tpu.matmul %30, %31, %cst_20 {dimension_numbers = #tpu.dot_dimension_numbers<[1], [0], [0], [1], [0, 0, 1, 1], [], []>} : vector<4x8xbf16>, vector<8x384xbf16>, vector<4x384xf32> -> vector<4x384xf32>
    %33 = arith.addf %28, %32 : vector<4x384xf32>
    %c6 = arith.constant 6 : index
    %c0_21 = arith.constant 0 : index
    %c0_22 = arith.constant 0 : index
    %34 = vector.load %arg2[%c6, %c0_21, %c0_22] : memref<9x4x8xbf16, #tpu.memory_space<vmem>>, vector<1x4x8xbf16>
    %35 = vector.shape_cast %34 : vector<1x4x8xbf16> to vector<4x8xbf16>
    %36 = vector.extract_strided_slice %2 {offsets = [0, 48], sizes = [8, 384], strides = [1, 1]} : vector<8x456xbf16> to vector<8x384xbf16>
    %cst_23 = arith.constant dense<0.000000e+00> : vector<4x384xf32>
    %37 = tpu.matmul %35, %36, %cst_23 {dimension_numbers = #tpu.dot_dimension_numbers<[1], [0], [0], [1], [0, 0, 1, 1], [], []>} : vector<4x8xbf16>, vector<8x384xbf16>, vector<4x384xf32> -> vector<4x384xf32>
    %38 = arith.addf %33, %37 : vector<4x384xf32>
    %c7 = arith.constant 7 : index
    %c0_24 = arith.constant 0 : index
    %c0_25 = arith.constant 0 : index
    %39 = vector.load %arg2[%c7, %c0_24, %c0_25] : memref<9x4x8xbf16, #tpu.memory_space<vmem>>, vector<1x4x8xbf16>
    %40 = vector.shape_cast %39 : vector<1x4x8xbf16> to vector<4x8xbf16>
    %41 = vector.extract_strided_slice %2 {offsets = [0, 49], sizes = [8, 384], strides = [1, 1]} : vector<8x456xbf16> to vector<8x384xbf16>
    %cst_26 = arith.constant dense<0.000000e+00> : vector<4x384xf32>
    %42 = tpu.matmul %40, %41, %cst_26 {dimension_numbers = #tpu.dot_dimension_numbers<[1], [0], [0], [1], [0, 0, 1, 1], [], []>} : vector<4x8xbf16>, vector<8x384xbf16>, vector<4x384xf32> -> vector<4x384xf32>
    %43 = arith.addf %38, %42 : vector<4x384xf32>
    %c8 = arith.constant 8 : index
    %c0_27 = arith.constant 0 : index
    %c0_28 = arith.constant 0 : index
    %44 = vector.load %arg2[%c8, %c0_27, %c0_28] : memref<9x4x8xbf16, #tpu.memory_space<vmem>>, vector<1x4x8xbf16>
    %45 = vector.shape_cast %44 : vector<1x4x8xbf16> to vector<4x8xbf16>
    %46 = vector.extract_strided_slice %2 {offsets = [0, 50], sizes = [8, 384], strides = [1, 1]} : vector<8x456xbf16> to vector<8x384xbf16>
    %cst_29 = arith.constant dense<0.000000e+00> : vector<4x384xf32>
    %47 = tpu.matmul %45, %46, %cst_29 {dimension_numbers = #tpu.dot_dimension_numbers<[1], [0], [0], [1], [0, 0, 1, 1], [], []>} : vector<4x8xbf16>, vector<8x384xbf16>, vector<4x384xf32> -> vector<4x384xf32>
    %48 = arith.addf %43, %47 : vector<4x384xf32>
    %c0_30 = arith.constant 0 : index
    %c0_31 = arith.constant 0 : index
    %49 = vector.load %arg3[%c0_30, %c0_31] : memref<4x1xf32, #tpu.memory_space<vmem>>, vector<4x1xf32>
    %50 = vector.broadcast %49 : vector<4x1xf32> to vector<4x384xf32>
    %51 = arith.addf %48, %50 : vector<4x384xf32>
    %cst_32 = arith.constant 0.000000e+00 : f32
    %52 = vector.broadcast %cst_32 : f32 to vector<4x384xf32>
    %53 = arith.subf %52, %51 : vector<4x384xf32>
    %54 = math.exp %53 : vector<4x384xf32>
    %cst_33 = arith.constant 1.000000e+00 : f32
    %55 = vector.broadcast %cst_33 : f32 to vector<4x384xf32>
    %56 = arith.addf %55, %54 : vector<4x384xf32>
    %57 = tpu.reciprocal %56 {approx = true} : vector<4x384xf32> -> vector<4x384xf32>
    %58 = arith.mulf %51, %57 : vector<4x384xf32>
    %cst_34 = arith.constant 0.000000e+00 : bf16
    %59 = vector.broadcast %cst_34 : bf16 to vector<4x456xbf16>
    %c0_35 = arith.constant 0 : index
    %c0_36 = arith.constant 0 : index
    %60 = vector.load %arg8[%c0_35, %c0_36] : memref<4x456xbf16, #tpu.memory_space<vmem>>, vector<4x456xbf16>
    tpu.vector_store %arg8[%c0_35, %c0_36], %59 {strides = array<i32>} : memref<4x456xbf16, #tpu.memory_space<vmem>>, vector<4x456xbf16>,
    %c0_37 = arith.constant 0 : index
    %c0_38 = arith.constant 0 : index
    %61 = vector.load %arg6[%c0_37, %c0_38] : memref<1x384xf32, #tpu.memory_space<vmem>>, vector<1x384xf32>
    %62 = vector.broadcast %61 : vector<1x384xf32> to vector<4x384xf32>
    %63 = arith.mulf %58, %62 : vector<4x384xf32>
    %64 = arith.truncf %63 : vector<4x384xf32> to vector<4x384xbf16>
    %c0_39 = arith.constant 0 : index
    %c25 = arith.constant 25 : index
    %65 = vector.load %arg8[%c0_39, %c25] : memref<4x456xbf16, #tpu.memory_space<vmem>>, vector<4x384xbf16>
    tpu.vector_store %arg8[%c0_39, %c25], %64 {strides = array<i32>} : memref<4x456xbf16, #tpu.memory_space<vmem>>, vector<4x384xbf16>,
    %c0_40 = arith.constant 0 : index
    %c0_41 = arith.constant 0 : index
    %66 = vector.load %arg8[%c0_40, %c0_41] : memref<4x456xbf16, #tpu.memory_space<vmem>>, vector<4x456xbf16>
    %cst_42 = arith.constant 0.000000e+00 : f32
    %67 = vector.broadcast %cst_42 : f32 to vector<8x384xf32>
    %c0_43 = arith.constant 0 : index
    %c0_44 = arith.constant 0 : index
    %c0_45 = arith.constant 0 : index
    %68 = vector.load %arg4[%c0_43, %c0_44, %c0_45] : memref<9x8x4xbf16, #tpu.memory_space<vmem>>, vector<1x8x4xbf16>
    %69 = vector.shape_cast %68 : vector<1x8x4xbf16> to vector<8x4xbf16>
    %70 = vector.extract_strided_slice %66 {offsets = [0, 0], sizes = [4, 384], strides = [1, 1]} : vector<4x456xbf16> to vector<4x384xbf16>
    %cst_46 = arith.constant dense<0.000000e+00> : vector<8x384xf32>
    %71 = tpu.matmul %69, %70, %cst_46 {dimension_numbers = #tpu.dot_dimension_numbers<[1], [0], [0], [1], [0, 0, 1, 1], [], []>} : vector<8x4xbf16>, vector<4x384xbf16>, vector<8x384xf32> -> vector<8x384xf32>
    %72 = arith.addf %67, %71 : vector<8x384xf32>
    %c1_47 = arith.constant 1 : index
    %c0_48 = arith.constant 0 : index
    %c0_49 = arith.constant 0 : index
    %73 = vector.load %arg4[%c1_47, %c0_48, %c0_49] : memref<9x8x4xbf16, #tpu.memory_space<vmem>>, vector<1x8x4xbf16>
    %74 = vector.shape_cast %73 : vector<1x8x4xbf16> to vector<8x4xbf16>
    %75 = vector.extract_strided_slice %66 {offsets = [0, 1], sizes = [4, 384], strides = [1, 1]} : vector<4x456xbf16> to vector<4x384xbf16>
    %cst_50 = arith.constant dense<0.000000e+00> : vector<8x384xf32>
    %76 = tpu.matmul %74, %75, %cst_50 {dimension_numbers = #tpu.dot_dimension_numbers<[1], [0], [0], [1], [0, 0, 1, 1], [], []>} : vector<8x4xbf16>, vector<4x384xbf16>, vector<8x384xf32> -> vector<8x384xf32>
    %77 = arith.addf %72, %76 : vector<8x384xf32>
    %c2_51 = arith.constant 2 : index
    %c0_52 = arith.constant 0 : index
    %c0_53 = arith.constant 0 : index
    %78 = vector.load %arg4[%c2_51, %c0_52, %c0_53] : memref<9x8x4xbf16, #tpu.memory_space<vmem>>, vector<1x8x4xbf16>
    %79 = vector.shape_cast %78 : vector<1x8x4xbf16> to vector<8x4xbf16>
    %80 = vector.extract_strided_slice %66 {offsets = [0, 2], sizes = [4, 384], strides = [1, 1]} : vector<4x456xbf16> to vector<4x384xbf16>
    %cst_54 = arith.constant dense<0.000000e+00> : vector<8x384xf32>
    %81 = tpu.matmul %79, %80, %cst_54 {dimension_numbers = #tpu.dot_dimension_numbers<[1], [0], [0], [1], [0, 0, 1, 1], [], []>} : vector<8x4xbf16>, vector<4x384xbf16>, vector<8x384xf32> -> vector<8x384xf32>
    %82 = arith.addf %77, %81 : vector<8x384xf32>
    %c3_55 = arith.constant 3 : index
    %c0_56 = arith.constant 0 : index
    %c0_57 = arith.constant 0 : index
    %83 = vector.load %arg4[%c3_55, %c0_56, %c0_57] : memref<9x8x4xbf16, #tpu.memory_space<vmem>>, vector<1x8x4xbf16>
    %84 = vector.shape_cast %83 : vector<1x8x4xbf16> to vector<8x4xbf16>
    %85 = vector.extract_strided_slice %66 {offsets = [0, 24], sizes = [4, 384], strides = [1, 1]} : vector<4x456xbf16> to vector<4x384xbf16>
    %cst_58 = arith.constant dense<0.000000e+00> : vector<8x384xf32>
    %86 = tpu.matmul %84, %85, %cst_58 {dimension_numbers = #tpu.dot_dimension_numbers<[1], [0], [0], [1], [0, 0, 1, 1], [], []>} : vector<8x4xbf16>, vector<4x384xbf16>, vector<8x384xf32> -> vector<8x384xf32>
    %87 = arith.addf %82, %86 : vector<8x384xf32>
    %c4_59 = arith.constant 4 : index
    %c0_60 = arith.constant 0 : index
    %c0_61 = arith.constant 0 : index
    %88 = vector.load %arg4[%c4_59, %c0_60, %c0_61] : memref<9x8x4xbf16, #tpu.memory_space<vmem>>, vector<1x8x4xbf16>
    %89 = vector.shape_cast %88 : vector<1x8x4xbf16> to vector<8x4xbf16>
    %90 = vector.extract_strided_slice %66 {offsets = [0, 25], sizes = [4, 384], strides = [1, 1]} : vector<4x456xbf16> to vector<4x384xbf16>
    %cst_62 = arith.constant dense<0.000000e+00> : vector<8x384xf32>
    %91 = tpu.matmul %89, %90, %cst_62 {dimension_numbers = #tpu.dot_dimension_numbers<[1], [0], [0], [1], [0, 0, 1, 1], [], []>} : vector<8x4xbf16>, vector<4x384xbf16>, vector<8x384xf32> -> vector<8x384xf32>
    %92 = arith.addf %87, %91 : vector<8x384xf32>
    %c5_63 = arith.constant 5 : index
    %c0_64 = arith.constant 0 : index
    %c0_65 = arith.constant 0 : index
    %93 = vector.load %arg4[%c5_63, %c0_64, %c0_65] : memref<9x8x4xbf16, #tpu.memory_space<vmem>>, vector<1x8x4xbf16>
    %94 = vector.shape_cast %93 : vector<1x8x4xbf16> to vector<8x4xbf16>
    %95 = vector.extract_strided_slice %66 {offsets = [0, 26], sizes = [4, 384], strides = [1, 1]} : vector<4x456xbf16> to vector<4x384xbf16>
    %cst_66 = arith.constant dense<0.000000e+00> : vector<8x384xf32>
    %96 = tpu.matmul %94, %95, %cst_66 {dimension_numbers = #tpu.dot_dimension_numbers<[1], [0], [0], [1], [0, 0, 1, 1], [], []>} : vector<8x4xbf16>, vector<4x384xbf16>, vector<8x384xf32> -> vector<8x384xf32>
    %97 = arith.addf %92, %96 : vector<8x384xf32>
    %c6_67 = arith.constant 6 : index
    %c0_68 = arith.constant 0 : index
    %c0_69 = arith.constant 0 : index
    %98 = vector.load %arg4[%c6_67, %c0_68, %c0_69] : memref<9x8x4xbf16, #tpu.memory_space<vmem>>, vector<1x8x4xbf16>
    %99 = vector.shape_cast %98 : vector<1x8x4xbf16> to vector<8x4xbf16>
    %100 = vector.extract_strided_slice %66 {offsets = [0, 48], sizes = [4, 384], strides = [1, 1]} : vector<4x456xbf16> to vector<4x384xbf16>
    %cst_70 = arith.constant dense<0.000000e+00> : vector<8x384xf32>
    %101 = tpu.matmul %99, %100, %cst_70 {dimension_numbers = #tpu.dot_dimension_numbers<[1], [0], [0], [1], [0, 0, 1, 1], [], []>} : vector<8x4xbf16>, vector<4x384xbf16>, vector<8x384xf32> -> vector<8x384xf32>
    %102 = arith.addf %97, %101 : vector<8x384xf32>
    %c7_71 = arith.constant 7 : index
    %c0_72 = arith.constant 0 : index
    %c0_73 = arith.constant 0 : index
    %103 = vector.load %arg4[%c7_71, %c0_72, %c0_73] : memref<9x8x4xbf16, #tpu.memory_space<vmem>>, vector<1x8x4xbf16>
    %104 = vector.shape_cast %103 : vector<1x8x4xbf16> to vector<8x4xbf16>
    %105 = vector.extract_strided_slice %66 {offsets = [0, 49], sizes = [4, 384], strides = [1, 1]} : vector<4x456xbf16> to vector<4x384xbf16>
    %cst_74 = arith.constant dense<0.000000e+00> : vector<8x384xf32>
    %106 = tpu.matmul %104, %105, %cst_74 {dimension_numbers = #tpu.dot_dimension_numbers<[1], [0], [0], [1], [0, 0, 1, 1], [], []>} : vector<8x4xbf16>, vector<4x384xbf16>, vector<8x384xf32> -> vector<8x384xf32>
    %107 = arith.addf %102, %106 : vector<8x384xf32>
    %c8_75 = arith.constant 8 : index
    %c0_76 = arith.constant 0 : index
    %c0_77 = arith.constant 0 : index
    %108 = vector.load %arg4[%c8_75, %c0_76, %c0_77] : memref<9x8x4xbf16, #tpu.memory_space<vmem>>, vector<1x8x4xbf16>
    %109 = vector.shape_cast %108 : vector<1x8x4xbf16> to vector<8x4xbf16>
    %110 = vector.extract_strided_slice %66 {offsets = [0, 50], sizes = [4, 384], strides = [1, 1]} : vector<4x456xbf16> to vector<4x384xbf16>
    %cst_78 = arith.constant dense<0.000000e+00> : vector<8x384xf32>
    %111 = tpu.matmul %109, %110, %cst_78 {dimension_numbers = #tpu.dot_dimension_numbers<[1], [0], [0], [1], [0, 0, 1, 1], [], []>} : vector<8x4xbf16>, vector<4x384xbf16>, vector<8x384xf32> -> vector<8x384xf32>
    %112 = arith.addf %107, %111 : vector<8x384xf32>
    %c0_79 = arith.constant 0 : index
    %c0_80 = arith.constant 0 : index
    %113 = vector.load %arg5[%c0_79, %c0_80] : memref<8x1xf32, #tpu.memory_space<vmem>>, vector<8x1xf32>
    %114 = vector.broadcast %113 : vector<8x1xf32> to vector<8x384xf32>
    %115 = arith.addf %112, %114 : vector<8x384xf32>
    %cst_81 = arith.constant 0.000000e+00 : f32
    %116 = vector.broadcast %cst_81 : f32 to vector<8x384xf32>
    %117 = arith.subf %116, %115 : vector<8x384xf32>
    %118 = math.exp %117 : vector<8x384xf32>
    %cst_82 = arith.constant 1.000000e+00 : f32
    %119 = vector.broadcast %cst_82 : f32 to vector<8x384xf32>
    %120 = arith.addf %119, %118 : vector<8x384xf32>
    %121 = tpu.reciprocal %120 {approx = true} : vector<8x384xf32> -> vector<8x384xf32>
    %122 = arith.mulf %115, %121 : vector<8x384xf32>
    %123 = vector.extract_strided_slice %1 {offsets = [0, 25], sizes = [8, 384], strides = [1, 1]} : vector<8x456xf32> to vector<8x384xf32>
    %124 = arith.addf %122, %123 : vector<8x384xf32>
    %c0_83 = arith.constant 0 : index
    %c0_84 = arith.constant 0 : index
    %c0_85 = arith.constant 0 : index
    %125 = vector.load %arg7[%c0_83, %c0_84, %c0_85] : memref<1x8x384xf32, #tpu.memory_space<vmem>>, vector<1x8x384xf32>
    %126 = vector.shape_cast %125 : vector<1x8x384xf32> to vector<8x384xf32>
    %127 = vector.shape_cast %124 : vector<8x384xf32> to vector<1x8x384xf32>
    tpu.vector_store %arg7[%c0_83, %c0_84, %c0_85], %127 {strides = array<i32>} : memref<1x8x384xf32, #tpu.memory_space<vmem>>, vector<1x8x384xf32>,
    return
  }
  func.func @transform_0(%arg0: i32) -> (i32, i32, i32) {
    %c0_i32 = arith.constant 0 : i32
    %c0_i32_0 = arith.constant 0 : i32
    %c0_i32_1 = arith.constant 0 : i32
    return %arg0, %c0_i32, %c0_i32_0 : i32, i32, i32
  }
  func.func @transform_1(%arg0: i32) -> (i32, i32, i32) {
    %c0_i32 = arith.constant 0 : i32
    %c0_i32_0 = arith.constant 0 : i32
    %c0_i32_1 = arith.constant 0 : i32
    %c0_i32_2 = arith.constant 0 : i32
    return %c0_i32, %c0_i32_0, %c0_i32_1 : i32, i32, i32
  }
  func.func @transform_2(%arg0: i32) -> (i32, i32) {
    %c0_i32 = arith.constant 0 : i32
    %c0_i32_0 = arith.constant 0 : i32
    %c0_i32_1 = arith.constant 0 : i32
    return %c0_i32, %c0_i32_0 : i32, i32
  }
  func.func @transform_3(%arg0: i32) -> (i32, i32, i32) {
    %c0_i32 = arith.constant 0 : i32
    %c0_i32_0 = arith.constant 0 : i32
    %c0_i32_1 = arith.constant 0 : i32
    %c0_i32_2 = arith.constant 0 : i32
    return %c0_i32, %c0_i32_0, %c0_i32_1 : i32, i32, i32
  }
  func.func @transform_4(%arg0: i32) -> (i32, i32) {
    %c0_i32 = arith.constant 0 : i32
    %c0_i32_0 = arith.constant 0 : i32
    %c0_i32_1 = arith.constant 0 : i32
    return %c0_i32, %c0_i32_0 : i32, i32
  }
  func.func @transform_5(%arg0: i32) -> (i32, i32) {
    %c0_i32 = arith.constant 0 : i32
    %c0_i32_0 = arith.constant 0 : i32
    %c0_i32_1 = arith.constant 0 : i32
    return %c0_i32, %c0_i32_0 : i32, i32
  }
  func.func @transform_6(%arg0: i32) -> (i32, i32, i32) {
    %c0_i32 = arith.constant 0 : i32
    %c0_i32_0 = arith.constant 0 : i32
    %c0_i32_1 = arith.constant 0 : i32
    return %arg0, %c0_i32, %c0_i32_0 : i32, i32, i32
  }
}

</mosaic_0001>

<bundles_post_ra>
// kernel: bottleneck_forward.1
= control target key start
LH: loop header
LB: loop body
LE: loop exit
PB: predicated region body
PF: predicated region fallthrough
CT: control target
= control target key end

     0   :  { %s2748_s21 = smov 0   ;;  %s3178_s0 = inlined_call_operand.vmem [shape: f32[2,8,456], index: 0, kind: input, shape index: {}]   ;;  %s3179_s1 = inlined_call_operand.vmem [shape: bf16[9,4,8], index: 1, kind: input, shape index: {}]   ;;  %s3180_s2 = inlined_call_operand.vmem [shape: f32[4,1], index: 2, kind: input, shape index: {}]   ;;  %s3181_s3 = inlined_call_operand.vmem [shape: bf16[9,8,4], index: 3, kind: input, shape index: {}]   ;;  %s3182_s4 = inlined_call_operand.vmem [shape: f32[8,1], index: 4, kind: input, shape index: {}]   ;;  %s3183_s5 = inlined_call_operand.vmem [shape: f32[1,384], index: 5, kind: input, shape index: {}]   ;;  %s3184_s6 = inlined_call_operand.vmem [shape: f32[2,8,384], index: 6, kind: output, shape index: {}]  }
   0x1 LB: > { %s2417_s22 = sadd.s32 4294967295, %s2698_s21   ;;  %p2421_p0 = scmp.ge.s32.totalorder %s2698_s21, 1  ;;  %s2698_s21 = sphi %s2748_s21, %s16_s21  }
   0x2   : > { %p212_p1 = scmp.lt.s32.totalorder %s2698_s21, 3 }
   0x4   : > { %p213_p2 = pnand %p2421_p0, %p212_p1 }
   0x5   : > { %p242_p3 = scmp.lt.s32.totalorder (!%p213_p2), %s2417_s22, 1  ;;  %v2700_v0 = vmov (!%p213_p2), 0.0   ;;  %v2701_v1 = vmov (!%p213_p2), 0   ;;  %vm2702_vm0 = vmmov (!%p213_p2), 0   ;;  %s2703_s27 = smov (!%p213_p2), 127   ;;  %vm276_vm1 = vcmask (!%p213_p2), 1039360  }
   0x6   : > { %216 = sbr.rel (%p213_p2) target bundleno = 1030 (0x406), region = 44  ;;  %2535 = vmatprep.subr.bf16.mxu1 (!%p213_p2), %v2700_v0  ;;  %326 = vmatprep.mubr.bf16.mxu0 (!%p213_p2), %v2701_v1  ;;  %s2704_s28 = smov (!%p213_p2), 126   ;;  %v1238_v10 = vld [vmem:[%s3180_s2] sm:$0xf] (!%p213_p2)  ;;  %vm284_vm2 = vcmask (!%p213_p2), 1043456   ;;  %vm280_vm3 = vcmask (!%p213_p2), 64512  }
   0x7   : > { %2537 = vmatprep.mubr.msk.bf16.mxu1 (!%p213_p2), %vm2702_vm0, %v2700_v0  ;;  %2665 = vset.pattern.permute.xlu0 (!%p213_p2), %v2701_v1  ;;  %s2705_s29 = smov (!%p213_p2), 104   ;;  %s2706_s30 = smov (!%p213_p2), 103   ;;  %v2425_v20 = vld [vmem:[%s3179_s1 + $0x2] sm:$0x3] (!%p213_p2)  ;;  %vm478_vm4 = vcmask (!%p213_p2), 1031168   ;;  %vm588_vm5 = vcmask (!%p213_p2), 850944  }
   0x8   : > { %2666 = vset.pattern.permute.xlu1 (!%p213_p2), %v2701_v1  ;;  %s2707_s7 = smov (!%p213_p2), 102   ;;  %s2708_s8 = smov (!%p213_p2), 80   ;;  %v261_v30 = vld [vmem:[%s3179_s1] sm:$0x3] (!%p213_p2)  ;;  %v2432_v40 = vld [vmem:[%s3179_s1 + $0x4] sm:$0x3] (!%p213_p2) }
   0x9   : > { %s2709_s9 = smov (!%p213_p2), 79   ;;  %s2710_s10 = smov (!%p213_p2), 78   ;;  %vm698_vm6 = vcmask (!%p213_p2), 842752   ;;  %v2436_v50 = vld [vmem:[%s3179_s1 + $0x6] sm:$0x3] (!%p213_p2)  ;;  %vm3188_vm7 = vcmask (!%p213_p2), 834560  }
   0xa   : > { %v2440_v60 = vld [vmem:[%s3179_s1 + $0x8] sm:$0x3] (!%p213_p2)  ;;  %vm3187_vm8 = vcmask (!%p213_p2), 654336   ;;  %vm3186_vm9 = vcmask (!%p213_p2), 646144   ;;  %vm3185_vm10 = vcmask (!%p213_p2), 637952   ;;  %vm1265_vm11 = vcmask (!%p213_p2), 1041408  }
   0xb   : > { %vm1266_vm12 = vcmask (!%p213_p2), 1043458   ;;  %vm1268_vm13 = vcmask (!%p213_p2), 1045508   ;;  %vm1270_vm14 = vcmask (!%p213_p2), 588806   ;;  %s2712_s19 = smov (!%p213_p2), 25  }
   0xc   : > { %vm1267_vm15 = vmor (!%p213_p2), %vm1266_vm12, %vm1265_vm11 }
   0xd   : > { %s3204_s22 = smov (!%p242_p3, %s2417_s22), 1 }
   0xe   : > { %s2498_s23 = sshll.u32 %s3204_s22, 5  ;;  %s2643_s18 = smul.u32 24, %s3204_s22 }
   0xf   : > { %s246_s26 = scalar_lea.vmem %s3178_s0, %s2498_s23 }
  0x10   : > { %v2768_v2 = vld [vmem:[%s246_s26 + $0x10] sm:$0xff]  ;;  %v2770_v3 = vld [vmem:[%s246_s26] sm:$0xff]  ;;  %v2772_v4 = vld [vmem:[%s246_s26 + $0x18] sm:$0xff] }
  0x11   : > { %v2776_v5 = vpack.c.bf16 %v2768_v2, %v2768_v2  ;;  %v2780_v6 = vpack.c.bf16 %v2770_v3, %v2770_v3  ;;  %v2782_v7 = vld [vmem:[%s246_s26 + $0x8] sm:$0xff]  ;;  %v260_v8 = vpack.c.bf16 %v2772_v4, %v2772_v4 }
  0x12   : > { %v258_v9 = vpack.c.bf16 %v2782_v7, %v2782_v7 }
  0x13   : > { %272 = vrot.lane.b32.xlu1 %v2776_v5, %s2703_s27  ;;  %268 = vrot.lane.b32.xlu0 %v2780_v6, %s2703_s27  ;;  %v379_v22 = vsel %vm284_vm2, %v2780_v6, 0  ;;  %v385_v23 = vsel %vm284_vm2, %v2776_v5, 0 }
  0x17   : > { %274 = vrot.lane.b32.xlu1 %v260_v8, %s2703_s27  ;;  %270 = vrot.lane.b32.xlu0 %v258_v9, %s2703_s27 }
  0x1b   : > { %470 = vrot.lane.b32.xlu0 %v2780_v6, %s2704_s28  ;;  %472 = vrot.lane.b32.xlu1 %v258_v9, %s2704_s28 }
  0x1f   : > { %474 = vrot.lane.b32.xlu0 %v2776_v5, %s2704_s28  ;;  %476 = vrot.lane.b32.xlu1 %v260_v8, %s2704_s28 }
  0x23   : > { %580 = vrot.lane.b32.xlu0 %v2780_v6, %s2705_s29  ;;  %582 = vrot.lane.b32.xlu1 %v258_v9, %s2705_s29 }
  0x27   : > { %584 = vrot.lane.b32.xlu0 %v2776_v5, %s2705_s29  ;;  %586 = vrot.lane.b32.xlu1 %v260_v8, %s2705_s29 }
  0x2b   : > { %690 = vrot.lane.b32.xlu0 %v2780_v6, %s2706_s30  ;;  %692 = vrot.lane.b32.xlu1 %v258_v9, %s2706_s30 }
  0x2f   : > { %694 = vrot.lane.b32.xlu0 %v2776_v5, %s2706_s30  ;;  %696 = vrot.lane.b32.xlu1 %v260_v8, %s2706_s30 }
  0x33   : > { %800 = vrot.lane.b32.xlu0 %v2780_v6, %s2707_s7  ;;  %802 = vrot.lane.b32.xlu1 %v258_v9, %s2707_s7 }
  0x37   : > { %804 = vrot.lane.b32.xlu0 %v2776_v5, %s2707_s7  ;;  %806 = vrot.lane.b32.xlu1 %v260_v8, %s2707_s7 }
  0x3b   : > { %910 = vrot.lane.b32.xlu0 %v2780_v6, %s2708_s8  ;;  %912 = vrot.lane.b32.xlu1 %v258_v9, %s2708_s8 }
  0x3f   : > { %914 = vrot.lane.b32.xlu0 %v2776_v5, %s2708_s8  ;;  %916 = vrot.lane.b32.xlu1 %v260_v8, %s2708_s8 }
  0x43   : > { %1020 = vrot.lane.b32.xlu0 %v2780_v6, %s2709_s9  ;;  %1022 = vrot.lane.b32.xlu1 %v258_v9, %s2709_s9 }
  0x47   : > { %1024 = vrot.lane.b32.xlu0 %v2776_v5, %s2709_s9  ;;  %1026 = vrot.lane.b32.xlu1 %v260_v8, %s2709_s9 }
  0x4b   : > { %1130 = vrot.lane.b32.xlu0 %v2780_v6, %s2710_s10  ;;  %1132 = vrot.lane.b32.xlu1 %v258_v9, %s2710_s10 }
  0x4f   : > { %1134 = vrot.lane.b32.xlu0 %v2776_v5, %s2710_s10  ;;  %1136 = vrot.lane.b32.xlu1 %v260_v8, %s2710_s10 }
  0x53   : > { %1241 = vperm.xlu0 %2665, %v1238_v10  }
  0x85   : > { %v273_v11 = vpop.permute.xlu1 %272  ;;  %v269_v12 = vpop.permute.xlu0 %268 }
  0x89   : > { %v275_v13 = vpop.permute.xlu1 %274  ;;  %v271_v14 = vpop.permute.xlu0 %270 }
  0x8a   : > { %v278_v15 = vsel %vm276_vm1, %v271_v14, %v273_v11  ;;  %v277_v16 = vsel %vm276_vm1, %v269_v12, %v271_v14  ;;  %v279_v17 = vsel %vm276_vm1, %v273_v11, %v275_v13  ;;  %v2444_v12 = vld [vmem:[%s3179_s1 + $0xa] sm:$0x3] }
  0x8b   : > { %2426 = vmatprep.subr.msk.bf16.mxu0 %vm284_vm2, %v278_v15  ;;  %v286_v18 = vsel %vm284_vm2, %v277_v16, 0  ;;  %v292_v19 = vsel %vm284_vm2, %v279_v17, 0 }
  0x8c   : > { %295 = vmatpush1.bf16.msra.mxu0 %v286_v18  ;;  %2536 = vmatpush3.bf16.msra.mxu1 %v292_v19 }
  0x8d   : > { %v471_v21 = vpop.permute.xlu0 %470  ;;  %2429 = vmatprep.subr.msk.bf16.mxu0 %vm284_vm2, %v258_v9  ;;  %2541 = vmatprep.subr.bf16.mxu1 %v2700_v0  ;;  %v473_v24 = vpop.permute.xlu1 %472 }
  0x8e   : > { %v479_v27 = vsel %vm478_vm4, %v471_v21, %v473_v24 }
  0x8f   : > { %2427 = vmatmul.mubr.msk.bf16.vlgmr.msra.gmra.mrb[0].mxu0 %vm280_vm3, %v2425_v20  ;;  %2538 = vmatmul.mubr.msk.bf16.vlgmr.msra.gmra.mrb[0].mxu1 %vm280_vm3, %v2425_v20  ;;  %v486_v31 = vsel %vm284_vm2, %v479_v27, 0 }
  0x90   : > { %388 = vmatpush1.bf16.msra.mxu0 %v379_v22  ;;  %2542 = vmatpush3.bf16.msra.mxu1 %v385_v23  ;;  %v2448_v22 = vld [vmem:[%s3179_s1 + $0xc] sm:$0x3] }
  0x91   : > { %v475_v25 = vpop.permute.xlu0 %474  ;;  %419 = vmatprep.mubr.bf16.mxu0 %v2701_v1  ;;  %2543 = vmatprep.mubr.msk.bf16.mxu1 %vm2702_vm0, %v2700_v0  ;;  %v477_v26 = vpop.permute.xlu1 %476 }
  0x92   : > { %v480_v28 = vsel %vm478_vm4, %v473_v24, %v475_v25  ;;  %v481_v29 = vsel %vm478_vm4, %v475_v25, %v477_v26  ;;  %2547 = vmatprep.subr.bf16.mxu1 %v2700_v0 }
  0x93   : > { %2433 = vmatprep.subr.msk.bf16.mxu0 %vm284_vm2, %v480_v28  ;;  %v492_v32 = vsel %vm284_vm2, %v481_v29, 0 }
  0x95   : > { %v581_v33 = vpop.permute.xlu0 %580  ;;  %v583_v34 = vpop.permute.xlu1 %582 }
  0x96   : > { %v589_v37 = vsel %vm588_vm5, %v581_v33, %v583_v34 }
  0x97   : > { %2430 = vmatmul.mubr.msk.bf16.vlgmr.msra.gmra.mrb[4].mxu0 %vm280_vm3, %v261_v30  ;;  %2544 = vmatmul.mubr.msk.bf16.vlgmr.msra.gmra.mrb[4].mxu1 %vm280_vm3, %v261_v30  ;;  %v596_v41 = vsel %vm284_vm2, %v589_v37, 0 }
  0x98   : > { %495 = vmatpush1.bf16.msra.mxu0 %v486_v31  ;;  %2548 = vmatpush3.bf16.msra.mxu1 %v492_v32  ;;  %v2452_v32 = vld [vmem:[%s3179_s1 + $0xe] sm:$0x3] }
  0x99   : > { %v585_v35 = vpop.permute.xlu0 %584  ;;  %526 = vmatprep.mubr.bf16.mxu0 %v2701_v1  ;;  %2549 = vmatprep.mubr.msk.bf16.mxu1 %vm2702_vm0, %v2700_v0  ;;  %v587_v36 = vpop.permute.xlu1 %586 }
  0x9a   : > { %v590_v38 = vsel %vm588_vm5, %v583_v34, %v585_v35  ;;  %v591_v39 = vsel %vm588_vm5, %v585_v35, %v587_v36  ;;  %2553 = vmatprep.subr.bf16.mxu1 %v2700_v0  ;;  %v2456_v35 = vld [vmem:[%s3179_s1 + $0x10] sm:$0x3] }
  0x9b   : > { %2437 = vmatprep.subr.msk.bf16.mxu0 %vm284_vm2, %v590_v38  ;;  %v602_v42 = vsel %vm284_vm2, %v591_v39, 0 }
  0x9d   : > { %v691_v43 = vpop.permute.xlu0 %690  ;;  %v693_v44 = vpop.permute.xlu1 %692 }
  0x9e   : > { %v699_v47 = vsel %vm698_vm6, %v691_v43, %v693_v44 }
  0x9f   : > { %2434 = vmatmul.mubr.msk.bf16.vlgmr.msra.gmra.mrb[8].mxu0 %vm280_vm3, %v2432_v40  ;;  %2550 = vmatmul.mubr.msk.bf16.vlgmr.msra.gmra.mrb[8].mxu1 %vm280_vm3, %v2432_v40  ;;  %v706_v51 = vsel %vm284_vm2, %v699_v47, 0 }
  0xa0   : > { %605 = vmatpush1.bf16.msra.mxu0 %v596_v41  ;;  %2554 = vmatpush3.bf16.msra.mxu1 %v602_v42 }
  0xa1   : > { %v695_v45 = vpop.permute.xlu0 %694  ;;  %636 = vmatprep.mubr.bf16.mxu0 %v2701_v1  ;;  %2555 = vmatprep.mubr.msk.bf16.mxu1 %vm2702_vm0, %v2700_v0  ;;  %v697_v46 = vpop.permute.xlu1 %696 }
  0xa2   : > { %v700_v48 = vsel %vm698_vm6, %v693_v44, %v695_v45  ;;  %v701_v49 = vsel %vm698_vm6, %v695_v45, %v697_v46  ;;  %2559 = vmatprep.subr.bf16.mxu1 %v2700_v0 }
  0xa3   : > { %2441 = vmatprep.subr.msk.bf16.mxu0 %vm284_vm2, %v700_v48  ;;  %v712_v52 = vsel %vm284_vm2, %v701_v49, 0 }
  0xa5   : > { %v801_v53 = vpop.permute.xlu0 %800  ;;  %v803_v54 = vpop.permute.xlu1 %802 }
  0xa6   : > { %v809_v57 = vsel %vm3188_vm7, %v801_v53, %v803_v54 }
  0xa7   : > { %2438 = vmatmul.mubr.msk.bf16.vlgmr.msra.gmra.mrb[12].mxu0 %vm280_vm3, %v2436_v50  ;;  %2556 = vmatmul.mubr.msk.bf16.vlgmr.msra.gmra.mrb[12].mxu1 %vm280_vm3, %v2436_v50  ;;  %v816_v61 = vsel %vm284_vm2, %v809_v57, 0 }
  0xa8   : > { %715 = vmatpush1.bf16.msra.mxu0 %v706_v51  ;;  %2560 = vmatpush3.bf16.msra.mxu1 %v712_v52 }
  0xa9   : > { %v805_v55 = vpop.permute.xlu0 %804  ;;  %746 = vmatprep.mubr.bf16.mxu0 %v2701_v1  ;;  %2561 = vmatprep.mubr.msk.bf16.mxu1 %vm2702_vm0, %v2700_v0  ;;  %v807_v56 = vpop.permute.xlu1 %806 }
  0xaa   : > { %v810_v58 = vsel %vm3188_vm7, %v803_v54, %v805_v55  ;;  %v811_v59 = vsel %vm3188_vm7, %v805_v55, %v807_v56  ;;  %2565 = vmatprep.subr.bf16.mxu1 %v2700_v0 }
  0xab   : > { %2445 = vmatprep.subr.msk.bf16.mxu0 %vm284_vm2, %v810_v58  ;;  %v822_v62 = vsel %vm284_vm2, %v811_v59, 0 }
  0xad   : > { %v911_v63 = vpop.permute.xlu0 %910  ;;  %v913_v5 = vpop.permute.xlu1 %912 }
  0xae   : > { %v919_v9 = vsel %vm3187_vm8, %v911_v63, %v913_v5 }
  0xaf   : > { %2442 = vmatmul.mubr.msk.bf16.vlgmr.msra.gmra.mrb[16].mxu0 %vm280_vm3, %v2440_v60  ;;  %2562 = vmatmul.mubr.msk.bf16.vlgmr.msra.gmra.mrb[16].mxu1 %vm280_vm3, %v2440_v60  ;;  %v926_v13 = vsel %vm284_vm2, %v919_v9, 0 }
  0xb0   : > { %825 = vmatpush1.bf16.msra.mxu0 %v816_v61  ;;  %2566 = vmatpush3.bf16.msra.mxu1 %v822_v62 }
  0xb1   : > { %v915_v6 = vpop.permute.xlu0 %914  ;;  %856 = vmatprep.mubr.bf16.mxu0 %v2701_v1  ;;  %2567 = vmatprep.mubr.msk.bf16.mxu1 %vm2702_vm0, %v2700_v0  ;;  %v917_v8 = vpop.permute.xlu1 %916 }
  0xb2   : > { %v920_v10 = vsel %vm3187_vm8, %v913_v5, %v915_v6  ;;  %v921_v11 = vsel %vm3187_vm8, %v915_v6, %v917_v8  ;;  %2571 = vmatprep.subr.bf16.mxu1 %v2700_v0 }
  0xb3   : > { %2449 = vmatprep.subr.msk.bf16.mxu0 %vm284_vm2, %v920_v10  ;;  %v932_v14 = vsel %vm284_vm2, %v921_v11, 0 }
  0xb5   : > { %v1021_v15 = vpop.permute.xlu0 %1020  ;;  %v1023_v16 = vpop.permute.xlu1 %1022 }
  0xb6   : > { %v1029_v19 = vsel %vm3186_vm9, %v1021_v15, %v1023_v16 }
  0xb7   : > { %2446 = vmatmul.mubr.msk.bf16.vlgmr.msra.gmra.mrb[20].mxu0 %vm280_vm3, %v2444_v12  ;;  %2568 = vmatmul.mubr.msk.bf16.vlgmr.msra.gmra.mrb[20].mxu1 %vm280_vm3, %v2444_v12  ;;  %v1036_v23 = vsel %vm284_vm2, %v1029_v19, 0 }
  0xb8   : > { %935 = vmatpush1.bf16.msra.mxu0 %v926_v13  ;;  %2572 = vmatpush3.bf16.msra.mxu1 %v932_v14 }
  0xb9   : > { %v1025_v17 = vpop.permute.xlu0 %1024  ;;  %966 = vmatprep.mubr.bf16.mxu0 %v2701_v1  ;;  %2573 = vmatprep.mubr.msk.bf16.mxu1 %vm2702_vm0, %v2700_v0  ;;  %v1027_v18 = vpop.permute.xlu1 %1026 }
  0xba   : > { %v1030_v20 = vsel %vm3186_vm9, %v1023_v16, %v1025_v17  ;;  %v1031_v21 = vsel %vm3186_vm9, %v1025_v17, %v1027_v18  ;;  %2577 = vmatprep.subr.bf16.mxu1 %v2700_v0 }
  0xbb   : > { %2453 = vmatprep.subr.msk.bf16.mxu0 %vm284_vm2, %v1030_v20  ;;  %v1042_v24 = vsel %vm284_vm2, %v1031_v21, 0 }
  0xbd   : > { %v1131_v25 = vpop.permute.xlu0 %1130  ;;  %v1133_v26 = vpop.permute.xlu1 %1132 }
  0xbe   : > { %v1139_v29 = vsel %vm3185_vm10, %v1131_v25, %v1133_v26 }
  0xbf   : > { %2450 = vmatmul.mubr.msk.bf16.vlgmr.msra.gmra.mrb[24].mxu0 %vm280_vm3, %v2448_v22  ;;  %2574 = vmatmul.mubr.msk.bf16.vlgmr.msra.gmra.mrb[24].mxu1 %vm280_vm3, %v2448_v22  ;;  %v1146_v33 = vsel %vm284_vm2, %v1139_v29, 0 }
  0xc0   : > { %1045 = vmatpush1.bf16.msra.mxu0 %v1036_v23  ;;  %2578 = vmatpush3.bf16.msra.mxu1 %v1042_v24 }
  0xc1   : > { %v1135_v27 = vpop.permute.xlu0 %1134  ;;  %1076 = vmatprep.mubr.bf16.mxu0 %v2701_v1  ;;  %2579 = vmatprep.mubr.msk.bf16.mxu1 %vm2702_vm0, %v2700_v0  ;;  %v1137_v28 = vpop.permute.xlu1 %1136 }
  0xc2   : > { %v1140_v30 = vsel %vm3185_vm10, %v1133_v26, %v1135_v27  ;;  %v1141_v31 = vsel %vm3185_vm10, %v1135_v27, %v1137_v28  ;;  %2583 = vmatprep.subr.bf16.mxu1 %v2700_v0  ;;  %vm1269_vm10 = vmor %vm1268_vm13, %vm1267_vm15 }
  0xc3   : > { %2457 = vmatprep.subr.msk.bf16.mxu0 %vm284_vm2, %v1140_v30  ;;  %v1152_v34 = vsel %vm284_vm2, %v1141_v31, 0  ;;  %vm1321_vm2 = vcmask 1041608   ;;  %vm1271_vm9 = vmor %vm1270_vm14, %vm1269_vm10  ;;  %vm3194_vm10 = vcmask 654336   ;;  %vm3197_vm14 = vcmask 646144  }
  0xc4   : > { %1272 = vst.msk [vmem:[#allocation2] sm:$0xff] %vm1271_vm9, %v2701_v1  ;;  %vm1322_vm8 = vmor %vm1266_vm12, %vm1321_vm2 }
  0xc5   : > { %vm2975_vm7 = vmor %vm1268_vm13, %vm1322_vm8  ;;  %vm1318_vm8 = vcmask 203776  }
  0xc6   : > { %vm3195_vm12 = vmmov %vm3194_vm10 }
  0xc7   : > { %2454 = vmatmul.mubr.msk.bf16.vlgmr.msra.gmra.mrb[28].mxu0 %vm280_vm3, %v2452_v32  ;;  %2580 = vmatmul.mubr.msk.bf16.vlgmr.msra.gmra.mrb[28].mxu1 %vm280_vm3, %v2452_v32  ;;  %vm3196_vm13 = vmmov %vm3194_vm10 }
  0xc8   : > { %1155 = vmatpush1.bf16.msra.mxu0 %v1146_v33  ;;  %2584 = vmatpush3.bf16.msra.mxu1 %v1152_v34  ;;  %vm3198_vm15 = vmmov %vm3197_vm14 }
  0xc9   : > { %1186 = vmatprep.mubr.bf16.mxu0 %v2701_v1  ;;  %2585 = vmatprep.mubr.msk.bf16.mxu1 %vm2702_vm0, %v2700_v0  ;;  %vm3199_vm2 = vmmov %vm3197_vm14 }
  0xca   : > { %2589 = vmatprep.subr.bf16.mxu1 %v2700_v0 }
  0xcf   : > { %2458 = vmatmul.mubr.msk.bf16.vlgmr.msra.gmra.mrb[32].mxu0 %vm280_vm3, %v2456_v35  ;;  %2586 = vmatmul.mubr.msk.bf16.vlgmr.msra.gmra.mrb[32].mxu1 %vm280_vm3, %v2456_v35  ;;  %vm1324_vm3 = vcmask 203782  }
  0xd0   : > { %1405 = vmatprep.mubr.bf16.mxu0 %v2701_v1  ;;  %2591 = vmatprep.mubr.msk.bf16.mxu1 %vm2702_vm0, %v2700_v0  ;;  %vm1325_vm9 = vmor %vm1324_vm3, %vm2975_vm7  ;;  %vm1360_vm7 = vcmask 31744   ;;  %vm3200_vm3 = vcmask 637952  }
 0x162   : > { %v328_v37 = vpop.f32.mrb[0].mxu0  ;;  %v369_v38 = vpop.f32.mrb[0].mxu1 }
 0x163   : > { %v330_v39 = vpop.f32.mrb[1].mxu0  ;;  %v2539_v40 = vpop.f32.mrb[1].mxu1 }
 0x164   : > { %v332_v41 = vpop.f32.mrb[2].mxu0  ;;  %v372_v42 = vpop.f32.mrb[2].mxu1 }
 0x165   : > { %v333_v43 = vpop.f32.mrb[3].mxu0  ;;  %v2540_v44 = vpop.f32.mrb[3].mxu1 }
 0x16a   : > { %v421_v45 = vpop.f32.mrb[4].mxu0  ;;  %v462_v46 = vpop.f32.mrb[4].mxu1 }
 0x16b   : > { %v422_v47 = vadd.f32 %v421_v45, %v328_v37  ;;  %v463_v48 = vadd.f32 %v462_v46, %v369_v38  ;;  %v423_v49 = vpop.f32.mrb[5].mxu0  ;;  %v2545_v50 = vpop.f32.mrb[5].mxu1 }
 0x16c   : > { %v424_v51 = vadd.f32 %v423_v49, %v330_v39  ;;  %v425_v52 = vpop.f32.mrb[6].mxu0  ;;  %v465_v53 = vpop.f32.mrb[6].mxu1 }
 0x16d   : > { %v426_v54 = vpop.f32.mrb[7].mxu0  ;;  %v2546_v55 = vpop.f32.mrb[7].mxu1 }
 0x172   : > { %v528_v56 = vpop.f32.mrb[8].mxu0  ;;  %v569_v57 = vpop.f32.mrb[8].mxu1 }
 0x173   : > { %v575_v58 = vadd.f32 %v528_v56, %v422_v47  ;;  %v577_v59 = vadd.f32 %v569_v57, %v463_v48  ;;  %v530_v60 = vpop.f32.mrb[9].mxu0  ;;  %v2551_v61 = vpop.f32.mrb[9].mxu1 }
 0x174   : > { %v576_v62 = vadd.f32 %v530_v60, %v424_v51  ;;  %v532_v63 = vpop.f32.mrb[10].mxu0  ;;  %v572_v5 = vpop.f32.mrb[10].mxu1 }
 0x175   : > { %v533_v6 = vpop.f32.mrb[11].mxu0  ;;  %v2552_v8 = vpop.f32.mrb[11].mxu1 }
 0x176   : > { %v1242_v6 = vpop.permute.xlu0 %1241 }
 0x17a   : > { %v638_v9 = vpop.f32.mrb[12].mxu0  ;;  %v679_v10 = vpop.f32.mrb[12].mxu1 }
 0x17b   : > { %v685_v11 = vadd.f32 %v638_v9, %v575_v58  ;;  %v687_v12 = vadd.f32 %v679_v10, %v577_v59  ;;  %v640_v13 = vpop.f32.mrb[13].mxu0  ;;  %v2557_v14 = vpop.f32.mrb[13].mxu1 }
 0x17c   : > { %v686_v15 = vadd.f32 %v640_v13, %v576_v62  ;;  %v642_v16 = vpop.f32.mrb[14].mxu0  ;;  %v682_v17 = vpop.f32.mrb[14].mxu1 }
 0x17d   : > { %v643_v18 = vpop.f32.mrb[15].mxu0  ;;  %v2558_v19 = vpop.f32.mrb[15].mxu1 }
 0x182   : > { %v748_v20 = vpop.f32.mrb[16].mxu0  ;;  %v789_v21 = vpop.f32.mrb[16].mxu1 }
 0x183   : > { %v795_v22 = vadd.f32 %v748_v20, %v685_v11  ;;  %v797_v23 = vadd.f32 %v789_v21, %v687_v12  ;;  %v750_v24 = vpop.f32.mrb[17].mxu0  ;;  %v2563_v25 = vpop.f32.mrb[17].mxu1 }
 0x184   : > { %v796_v26 = vadd.f32 %v750_v24, %v686_v15  ;;  %v752_v27 = vpop.f32.mrb[18].mxu0  ;;  %v792_v28 = vpop.f32.mrb[18].mxu1 }
 0x185   : > { %v753_v29 = vpop.f32.mrb[19].mxu0  ;;  %v2564_v30 = vpop.f32.mrb[19].mxu1 }
 0x186   : > { %v1275_v29 = vlaneseq }
 0x18a   : > { %v858_v31 = vpop.f32.mrb[20].mxu0  ;;  %v899_v32 = vpop.f32.mrb[20].mxu1 }
 0x18b   : > { %v905_v33 = vadd.f32 %v858_v31, %v795_v22  ;;  %v907_v34 = vadd.f32 %v899_v32, %v797_v23  ;;  %v860_v35 = vpop.f32.mrb[21].mxu0  ;;  %v2569_v37 = vpop.f32.mrb[21].mxu1 }
 0x18c   : > { %v906_v38 = vadd.f32 %v860_v35, %v796_v26  ;;  %v862_v39 = vpop.f32.mrb[22].mxu0  ;;  %v902_v40 = vpop.f32.mrb[22].mxu1  ;;  %v1276_v35 = vshrl.u32 %v1275_v29, 7 }
 0x18d   : > { %v863_v41 = vpop.f32.mrb[23].mxu0  ;;  %v2570_v42 = vpop.f32.mrb[23].mxu1  ;;  %v2711_v40 = vmov 1983009808  }
 0x18e   : > { %v1277_v37 = vsub.s32 0, %v1276_v35  ;;  %v1281_v39 = vsub.s32 1, %v1276_v35  ;;  %v1301_v41 = vunpack.c.l.s4 %v2711_v40  ;;  %v1285_v42 = vsub.s32 2, %v1276_v35 }
 0x192   : > { %v968_v43 = vpop.f32.mrb[24].mxu0  ;;  %v1009_v44 = vpop.f32.mrb[24].mxu1 }
 0x193   : > { %v1015_v45 = vadd.f32 %v968_v43, %v905_v33  ;;  %v1017_v46 = vadd.f32 %v1009_v44, %v907_v34  ;;  %v970_v47 = vpop.f32.mrb[25].mxu0  ;;  %v2575_v48 = vpop.f32.mrb[25].mxu1 }
 0x194   : > { %v1016_v49 = vadd.f32 %v970_v47, %v906_v38  ;;  %v972_v50 = vpop.f32.mrb[26].mxu0  ;;  %v1012_v51 = vpop.f32.mrb[26].mxu1  ;;  %v1273_v38 = vld [vmem:[%s3183_s5] sm:$0x7] }
 0x195   : > { %v973_v52 = vpop.f32.mrb[27].mxu0  ;;  %v2576_v53 = vpop.f32.mrb[27].mxu1  ;;  %v1278_v43 = vrot.slane %v1273_v38, %v1277_v37  ;;  %v1286_v48 = vrot.slane %v1273_v38, %v1285_v42 }
 0x19a   : > { %v1078_v54 = vpop.f32.mrb[28].mxu0  ;;  %v1119_v55 = vpop.f32.mrb[28].mxu1 }
 0x19b   : > { %v1125_v56 = vadd.f32 %v1078_v54, %v1015_v45  ;;  %v1127_v57 = vadd.f32 %v1119_v55, %v1017_v46  ;;  %v1080_v58 = vpop.f32.mrb[29].mxu0  ;;  %v2581_v59 = vpop.f32.mrb[29].mxu1  ;;  %v1282_v45 = vrot.slane %v1273_v38, %v1281_v39  ;;  %v1302_v46 = vunpack.c.0.s8 %v1301_v41  ;;  %v2468_v38 = vld [vmem:[%s3181_s3 + $0x8] sm:$0xf] }
 0x19c   : > { %v1126_v60 = vadd.f32 %v1080_v58, %v1016_v49  ;;  %v1082_v61 = vpop.f32.mrb[30].mxu0  ;;  %v1122_v62 = vpop.f32.mrb[30].mxu1 }
 0x19d   : > { %v1083_v63 = vpop.f32.mrb[31].mxu0  ;;  %v2582_v5 = vpop.f32.mrb[31].mxu1  ;;  %v1305_v55 = vsub.s32 %v1302_v46, %v1276_v35 }
 0x1a2   : > { %v1188_v8 = vpop.f32.mrb[32].mxu0  ;;  %v1229_v9 = vpop.f32.mrb[32].mxu1 }
 0x1a3   : > { %v1235_v10 = vadd.f32 %v1188_v8, %v1125_v56  ;;  %v1237_v11 = vadd.f32 %v1229_v9, %v1127_v57  ;;  %v1190_v12 = vpop.f32.mrb[33].mxu0  ;;  %v2587_v13 = vpop.f32.mrb[33].mxu1 }
 0x1a4   : > { %v1236_v14 = vadd.f32 %v1190_v12, %v1126_v60  ;;  %v1232_v15 = vpop.f32.mrb[34].mxu1  ;;  %v1192_v16 = vpop.f32.mrb[34].mxu0  ;;  %v2310_v12 = vld [vmem:[%s3182_s4] sm:$0xff] }
 0x1a5   : > { %v1244_v17 = vadd.f32 %v1242_v6, %v1235_v10  ;;  %v1246_v18 = vadd.f32 %v1242_v6, %v1237_v11  ;;  %v1193_v19 = vpop.f32.mrb[35].mxu0  ;;  %v2588_v20 = vpop.f32.mrb[35].mxu1 }
 0x1a6   : > { %v1245_v21 = vadd.f32 %v1242_v6, %v1236_v14 }
 0x1a7   : > { %v1247_v22 = vsub.f32 0.0, %v1244_v17  ;;  %v1249_v23 = vsub.f32 0.0, %v1246_v18 }
 0x1a8   : > { %v1248_v24 = vsub.f32 0.0, %v1245_v21 }
 0x1a9   : > { %v1250_v25 = vmul.f32 1.442695, %v1247_v22  ;;  %v1254_v26 = vmul.f32 1.442695, %v1249_v23 }
 0x1aa   : > { %v1252_v27 = vmul.f32 1.442695, %v1248_v24 }
 0x1ab   : > { %2668 = vpow2.f32 %v1250_v25 }
 0x1ac   : > { %2670 = vpow2.f32 %v1252_v27  ;;  %v1328_v27 = vld [vmem:[%s3181_s3] sm:$0xf] }
 0x1ad   : > { %2672 = vpow2.f32 %v1254_v26 }
 0x1b5   : > { %v2669_v28 = vpop.eup %2668 }
 0x1b6   : > { %v2671_v30 = vpop.eup %2670  ;;  %v1256_v31 = vadd.f32 1.0, %v2669_v28 }
 0x1b7   : > { %v2673_v32 = vpop.eup %2672  ;;  %v1257_v33 = vadd.f32 1.0, %v2671_v30 }
 0x1b8   : > { %v1258_v34 = vadd.f32 1.0, %v2673_v32  ;;  %2674 = vrcp.f32 %v1256_v31 }
 0x1b9   : > { %2676 = vrcp.f32 %v1257_v33 }
 0x1ba   : > { %2678 = vrcp.f32 %v1258_v34 }
 0x1c2   : > { %v2675_v44 = vpop.eup %2674 }
 0x1c3   : > { %v2677_v47 = vpop.eup %2676  ;;  %v1262_v49 = vmul.f32 %v2675_v44, %v1244_v17 }
 0x1c4   : > { %v2679_v50 = vpop.eup %2678  ;;  %v1263_v51 = vmul.f32 %v2677_v47, %v1245_v21 }
 0x1c5   : > { %v1264_v52 = vmul.f32 %v2679_v50, %v1246_v18  ;;  %v1290_v53 = vmul.f32 %v1278_v43, %v1262_v49 }
 0x1c6   : > { %v1291_v54 = vmul.f32 %v1282_v45, %v1263_v51 }
 0x1c7   : > { %v1292_v56 = vmul.f32 %v1286_v48, %v1264_v52  ;;  %v2472_v48 = vld [vmem:[%s3181_s3 + $0xc] sm:$0xf] }
 0x1c8   : > { %v2460_v57 = vpack.c.bf16 %v1291_v54, %v1290_v53 }
 0x1c9   : > { %v1295_v58 = vpack.c.bf16 %v1292_v56, %v1292_v56 }
 0x1ca   : > { %v1306_v59 = vrot.slane %v2460_v57, %v1305_v55 }
 0x1cb   : > { %v1313_v60 = vrot.slane %v1295_v58, %v1305_v55  ;;  %v2476_v58 = vld [vmem:[%s3181_s3 + $0x10] sm:$0xf] }
 0x1cd   : > { %v1314_v61 = vcombine.low %v1306_v59, %v1313_v60 }
 0x1cf   : > { %1315 = vrot.lane.b32.xlu1 %v1314_v61, %s2712_s19 }
 0x241   : > { %v1316_v62 = vpop.permute.xlu1 %1315 }
 0x242   : > { %v1317_v63 = vrot.slane %v1316_v62, 6 }
 0x244   : > { %v1319_v5 = vsel %vm1318_vm8, %v1317_v63, %v1316_v62  ;;  %vm3201_vm8 = vmmov %vm3200_vm3 }
 0x245   : > { %1326 = vst.msk [vmem:[#allocation2] sm:$0xff] %vm1325_vm9, %v1319_v5  ;;  %vm3202_vm9 = vmmov %vm3200_vm3 }
 0x24c   : > { %v1327_v6 = vld [vmem:[#allocation2] sm:$0xff] }
 0x24d   : > { %v1332_v8 = vcombine.high %v1327_v6, %v1327_v6  ;;  %v1339_v9 = vrot.slane %v1327_v6, %v1305_v55 }
 0x24f   : > { %v2984_v10 = vrot.slane %v1332_v8, %v1305_v55  ;;  %1349 = vrot.lane.b32.xlu1 %v1339_v9, %s2703_s27  ;;  %v1347_v11 = vcombine.high %v1339_v9, %v1339_v9  ;;  %v1458_v21 = vsel %vm1265_vm11, %v1339_v9, 0 }
 0x251   : > { %1351 = vrot.lane.b32.xlu0 %v1347_v11, %s2703_s27  ;;  %v1348_v36 = vcombine.high %v2984_v10, %v2984_v10  ;;  %v1464_v23 = vsel %vm1265_vm11, %v2984_v10, 0 }
 0x253   : > { %1353 = vrot.lane.b32.xlu1 %v2984_v10, %s2703_s27 }
 0x255   : > { %1355 = vrot.lane.b32.xlu0 %v1348_v36, %s2703_s27 }
 0x257   : > { %1549 = vrot.lane.b32.xlu1 %v1339_v9, %s2704_s28 }
 0x259   : > { %1551 = vrot.lane.b32.xlu0 %v1347_v11, %s2704_s28 }
 0x25b   : > { %1553 = vrot.lane.b32.xlu1 %v2984_v10, %s2704_s28 }
 0x25d   : > { %1555 = vrot.lane.b32.xlu0 %v1348_v36, %s2704_s28  ;;  %s251_s28 = scalar_lea.vmem %s3184_s6, %s2643_s18 }
 0x25f   : > { %1658 = vrot.lane.b32.xlu1 %v1339_v9, %s2705_s29 }
 0x261   : > { %1660 = vrot.lane.b32.xlu0 %v1347_v11, %s2705_s29 }
 0x263   : > { %1662 = vrot.lane.b32.xlu1 %v2984_v10, %s2705_s29 }
 0x265   : > { %1664 = vrot.lane.b32.xlu0 %v1348_v36, %s2705_s29 }
 0x267   : > { %1767 = vrot.lane.b32.xlu1 %v1339_v9, %s2706_s30 }
 0x269   : > { %1769 = vrot.lane.b32.xlu0 %v1347_v11, %s2706_s30 }
 0x26b   : > { %1771 = vrot.lane.b32.xlu1 %v2984_v10, %s2706_s30 }
 0x26d   : > { %1773 = vrot.lane.b32.xlu0 %v1348_v36, %s2706_s30 }
 0x26f   : > { %1876 = vrot.lane.b32.xlu1 %v1339_v9, %s2707_s7 }
 0x271   : > { %1878 = vrot.lane.b32.xlu0 %v1347_v11, %s2707_s7 }
 0x273   : > { %1880 = vrot.lane.b32.xlu1 %v2984_v10, %s2707_s7 }
 0x275   : > { %1882 = vrot.lane.b32.xlu0 %v1348_v36, %s2707_s7 }
 0x277   : > { %1985 = vrot.lane.b32.xlu1 %v1339_v9, %s2708_s8 }
 0x279   : > { %1987 = vrot.lane.b32.xlu0 %v1347_v11, %s2708_s8 }
 0x27b   : > { %1989 = vrot.lane.b32.xlu1 %v2984_v10, %s2708_s8 }
 0x27d   : > { %1991 = vrot.lane.b32.xlu0 %v1348_v36, %s2708_s8 }
 0x27f   : > { %2094 = vrot.lane.b32.xlu1 %v1339_v9, %s2709_s9 }
 0x281   : > { %2096 = vrot.lane.b32.xlu0 %v1347_v11, %s2709_s9 }
 0x283   : > { %2098 = vrot.lane.b32.xlu1 %v2984_v10, %s2709_s9 }
 0x285   : > { %2100 = vrot.lane.b32.xlu0 %v1348_v36, %s2709_s9 }
 0x287   : > { %2203 = vrot.lane.b32.xlu1 %v1339_v9, %s2710_s10 }
 0x289   : > { %2205 = vrot.lane.b32.xlu0 %v1347_v11, %s2710_s10 }
 0x28b   : > { %2207 = vrot.lane.b32.xlu1 %v2984_v10, %s2710_s10  ;;  %v2480_v10 = vld [vmem:[%s3181_s3 + $0x14] sm:$0xf] }
 0x28d   : > { %2209 = vrot.lane.b32.xlu0 %v1348_v36, %s2710_s10 }
 0x28f   : > { %2313 = vperm.xlu1 %2666, %v2310_v12  }
 0x291   : > { %2341 = vrot.lane.b32.xlu0 %v2770_v3, %s2706_s30 }
 0x293   : > { %2343 = vrot.lane.b32.xlu1 %v2782_v7, %s2706_s30 }
 0x295   : > { %2345 = vrot.lane.b32.xlu0 %v2768_v2, %s2706_s30  ;;  %v2461_v2 = vld [vmem:[%s3181_s3 + $0x4] sm:$0xf] }
 0x297   : > { %2347 = vrot.lane.b32.xlu1 %v2772_v4, %s2706_s30 }
 0x2c1   : > { %v1350_v13 = vpop.permute.xlu1 %1349 }
 0x2c3   : > { %v1352_v14 = vpop.permute.xlu0 %1351 }
 0x2c4   : > { %v1357_v15 = vsel %vm276_vm1, %v1350_v13, %v1352_v14 }
 0x2c5   : > { %v1354_v16 = vpop.permute.xlu1 %1353  ;;  %v1365_v18 = vsel %vm1265_vm11, %v1357_v15, 0 }
 0x2c6   : > { %v1358_v17 = vsel %vm276_vm1, %v1352_v14, %v1354_v16 }
 0x2c7   : > { %2462 = vmatprep.subr.msk.bf16.mxu0 %vm1265_vm11, %v1358_v17  ;;  %v1356_v3 = vpop.permute.xlu0 %1355 }
 0x2c8   : > { %v1359_v7 = vsel %vm276_vm1, %v1354_v16, %v1356_v3  ;;  %1374 = vmatpush1.bf16.msra.mxu0 %v1365_v18  ;;  %vm3191_vm1 = vcmask 834560   ;;  %v2484_v3 = vld [vmem:[%s3181_s3 + $0x18] sm:$0xf] }
 0x2c9   : > { %v1371_v4 = vsel %vm1265_vm11, %v1359_v7, 0  ;;  %2465 = vmatprep.subr.msk.bf16.mxu0 %vm1265_vm11, %v1347_v11  ;;  %v1550_v19 = vpop.permute.xlu1 %1549 }
 0x2ca   : > { %2590 = vmatpush3.bf16.msra.mxu1 %v1371_v4 }
 0x2cb   : > { %2463 = vmatmul.mubr.msk.bf16.vlgmr.msra.gmra.mrb[36].mxu0 %vm1360_vm7, %v2461_v2  ;;  %v1552_v20 = vpop.permute.xlu0 %1551  ;;  %2595 = vmatprep.subr.bf16.mxu1 %v2700_v0 }
 0x2cc   : > { %1467 = vmatpush1.bf16.msra.mxu0 %v1458_v21  ;;  %1498 = vmatprep.mubr.bf16.mxu0 %v2701_v1  ;;  %v1557_v26 = vsel %vm478_vm4, %v1550_v19, %v1552_v20 }
 0x2cd   : > { %v1554_v22 = vpop.permute.xlu1 %1553  ;;  %2592 = vmatmul.mubr.msk.bf16.vlgmr.msra.gmra.mrb[36].mxu1 %vm1360_vm7, %v2461_v2  ;;  %v1564_v30 = vsel %vm1265_vm11, %v1557_v26, 0 }
 0x2ce   : > { %v1558_v24 = vsel %vm478_vm4, %v1552_v20, %v1554_v22  ;;  %2596 = vmatpush3.bf16.msra.mxu1 %v1464_v23  ;;  %2597 = vmatprep.mubr.msk.bf16.mxu1 %vm2702_vm0, %v2700_v0 }
 0x2cf   : > { %2469 = vmatprep.subr.msk.bf16.mxu0 %vm1265_vm11, %v1558_v24  ;;  %v1556_v25 = vpop.permute.xlu0 %1555  ;;  %2601 = vmatprep.subr.bf16.mxu1 %v2700_v0 }
 0x2d0   : > { %v1559_v29 = vsel %vm478_vm4, %v1554_v22, %v1556_v25  ;;  %vm3192_vm4 = vmmov %vm3191_vm1  ;;  %v2488_v25 = vld [vmem:[%s3181_s3 + $0x1c] sm:$0xf] }
 0x2d1   : > { %v1659_v28 = vpop.permute.xlu1 %1658  ;;  %v1570_v32 = vsel %vm1265_vm11, %v1559_v29, 0  ;;  %v2492_v29 = vld [vmem:[%s3181_s3 + $0x20] sm:$0xf] }
 0x2d3   : > { %2466 = vmatmul.mubr.msk.bf16.vlgmr.msra.gmra.mrb[40].mxu0 %vm1360_vm7, %v1328_v27  ;;  %v1661_v31 = vpop.permute.xlu0 %1660 }
 0x2d4   : > { %1573 = vmatpush1.bf16.msra.mxu0 %v1564_v30  ;;  %1604 = vmatprep.mubr.bf16.mxu0 %v2701_v1  ;;  %v1666_v37 = vsel %vm588_vm5, %v1659_v28, %v1661_v31 }
 0x2d5   : > { %v1663_v33 = vpop.permute.xlu1 %1662  ;;  %2598 = vmatmul.mubr.msk.bf16.vlgmr.msra.gmra.mrb[40].mxu1 %vm1360_vm7, %v1328_v27  ;;  %v1673_v41 = vsel %vm1265_vm11, %v1666_v37, 0 }
 0x2d6   : > { %v1667_v34 = vsel %vm588_vm5, %v1661_v31, %v1663_v33  ;;  %2602 = vmatpush3.bf16.msra.mxu1 %v1570_v32  ;;  %2603 = vmatprep.mubr.msk.bf16.mxu1 %vm2702_vm0, %v2700_v0 }
 0x2d7   : > { %2473 = vmatprep.subr.msk.bf16.mxu0 %vm1265_vm11, %v1667_v34  ;;  %v1665_v35 = vpop.permute.xlu0 %1664  ;;  %2607 = vmatprep.subr.bf16.mxu1 %v2700_v0 }
 0x2d8   : > { %v1668_v40 = vsel %vm588_vm5, %v1663_v33, %v1665_v35  ;;  %vm3193_vm5 = vmmov %vm3191_vm1 }
 0x2d9   : > { %v1768_v39 = vpop.permute.xlu1 %1767  ;;  %v1679_v43 = vsel %vm1265_vm11, %v1668_v40, 0 }
 0x2db   : > { %2470 = vmatmul.mubr.msk.bf16.vlgmr.msra.gmra.mrb[44].mxu0 %vm1360_vm7, %v2468_v38  ;;  %v1770_v42 = vpop.permute.xlu0 %1769 }
 0x2dc   : > { %1682 = vmatpush1.bf16.msra.mxu0 %v1673_v41  ;;  %1713 = vmatprep.mubr.bf16.mxu0 %v2701_v1  ;;  %v1775_v47 = vsel %vm698_vm6, %v1768_v39, %v1770_v42 }
 0x2dd   : > { %v1772_v44 = vpop.permute.xlu1 %1771  ;;  %2604 = vmatmul.mubr.msk.bf16.vlgmr.msra.gmra.mrb[44].mxu1 %vm1360_vm7, %v2468_v38  ;;  %v1782_v51 = vsel %vm1265_vm11, %v1775_v47, 0 }
 0x2de   : > { %v1776_v45 = vsel %vm698_vm6, %v1770_v42, %v1772_v44  ;;  %2608 = vmatpush3.bf16.msra.mxu1 %v1679_v43  ;;  %2609 = vmatprep.mubr.msk.bf16.mxu1 %vm2702_vm0, %v2700_v0 }
 0x2df   : > { %2477 = vmatprep.subr.msk.bf16.mxu0 %vm1265_vm11, %v1776_v45  ;;  %v1774_v46 = vpop.permute.xlu0 %1773  ;;  %2613 = vmatprep.subr.bf16.mxu1 %v2700_v0 }
 0x2e0   : > { %v1777_v50 = vsel %vm698_vm6, %v1772_v44, %v1774_v46 }
 0x2e1   : > { %v1877_v49 = vpop.permute.xlu1 %1876  ;;  %v1788_v53 = vsel %vm1265_vm11, %v1777_v50, 0 }
 0x2e3   : > { %2474 = vmatmul.mubr.msk.bf16.vlgmr.msra.gmra.mrb[48].mxu0 %vm1360_vm7, %v2472_v48  ;;  %v1879_v52 = vpop.permute.xlu0 %1878 }
 0x2e4   : > { %1791 = vmatpush1.bf16.msra.mxu0 %v1782_v51  ;;  %1822 = vmatprep.mubr.bf16.mxu0 %v2701_v1  ;;  %v1884_v57 = vsel %vm3192_vm4, %v1877_v49, %v1879_v52 }
 0x2e5   : > { %v1881_v54 = vpop.permute.xlu1 %1880  ;;  %2610 = vmatmul.mubr.msk.bf16.vlgmr.msra.gmra.mrb[48].mxu1 %vm1360_vm7, %v2472_v48  ;;  %v1891_v61 = vsel %vm1265_vm11, %v1884_v57, 0 }
 0x2e6   : > { %v1885_v55 = vsel %vm3191_vm1, %v1879_v52, %v1881_v54  ;;  %2614 = vmatpush3.bf16.msra.mxu1 %v1788_v53  ;;  %2615 = vmatprep.mubr.msk.bf16.mxu1 %vm2702_vm0, %v2700_v0 }
 0x2e7   : > { %2481 = vmatprep.subr.msk.bf16.mxu0 %vm1265_vm11, %v1885_v55  ;;  %v1883_v56 = vpop.permute.xlu0 %1882  ;;  %2619 = vmatprep.subr.bf16.mxu1 %v2700_v0 }
 0x2e8   : > { %v1886_v60 = vsel %vm3193_vm5, %v1881_v54, %v1883_v56 }
 0x2e9   : > { %v1986_v59 = vpop.permute.xlu1 %1985  ;;  %v1897_v63 = vsel %vm1265_vm11, %v1886_v60, 0 }
 0x2eb   : > { %2478 = vmatmul.mubr.msk.bf16.vlgmr.msra.gmra.mrb[52].mxu0 %vm1360_vm7, %v2476_v58  ;;  %v1988_v62 = vpop.permute.xlu0 %1987 }
 0x2ec   : > { %1900 = vmatpush1.bf16.msra.mxu0 %v1891_v61  ;;  %1931 = vmatprep.mubr.bf16.mxu0 %v2701_v1  ;;  %v1993_v9 = vsel %vm3195_vm12, %v1986_v59, %v1988_v62 }
 0x2ed   : > { %v1990_v5 = vpop.permute.xlu1 %1989  ;;  %2616 = vmatmul.mubr.msk.bf16.vlgmr.msra.gmra.mrb[52].mxu1 %vm1360_vm7, %v2476_v58  ;;  %v2000_v12 = vsel %vm1265_vm11, %v1993_v9, 0 }
 0x2ee   : > { %v1994_v6 = vsel %vm3194_vm10, %v1988_v62, %v1990_v5  ;;  %2620 = vmatpush3.bf16.msra.mxu1 %v1897_v63  ;;  %2621 = vmatprep.mubr.msk.bf16.mxu1 %vm2702_vm0, %v2700_v0 }
 0x2ef   : > { %2485 = vmatprep.subr.msk.bf16.mxu0 %vm1265_vm11, %v1994_v6  ;;  %v1992_v8 = vpop.permute.xlu0 %1991  ;;  %2625 = vmatprep.subr.bf16.mxu1 %v2700_v0 }
 0x2f0   : > { %v1995_v36 = vsel %vm3196_vm13, %v1990_v5, %v1992_v8 }
 0x2f1   : > { %v2095_v11 = vpop.permute.xlu1 %2094  ;;  %v2006_v14 = vsel %vm1265_vm11, %v1995_v36, 0 }
 0x2f3   : > { %2482 = vmatmul.mubr.msk.bf16.vlgmr.msra.gmra.mrb[56].mxu0 %vm1360_vm7, %v2480_v10  ;;  %v2097_v13 = vpop.permute.xlu0 %2096 }
 0x2f4   : > { %2009 = vmatpush1.bf16.msra.mxu0 %v2000_v12  ;;  %2040 = vmatprep.mubr.bf16.mxu0 %v2701_v1  ;;  %v2102_v18 = vsel %vm3198_vm15, %v2095_v11, %v2097_v13 }
 0x2f5   : > { %v2099_v15 = vpop.permute.xlu1 %2098  ;;  %2622 = vmatmul.mubr.msk.bf16.vlgmr.msra.gmra.mrb[56].mxu1 %vm1360_vm7, %v2480_v10  ;;  %v2109_v4 = vsel %vm1265_vm11, %v2102_v18, 0 }
 0x2f6   : > { %v2103_v16 = vsel %vm3197_vm14, %v2097_v13, %v2099_v15  ;;  %2626 = vmatpush3.bf16.msra.mxu1 %v2006_v14  ;;  %2627 = vmatprep.mubr.msk.bf16.mxu1 %vm2702_vm0, %v2700_v0 }
 0x2f7   : > { %2489 = vmatprep.subr.msk.bf16.mxu0 %vm1265_vm11, %v2103_v16  ;;  %v2101_v17 = vpop.permute.xlu0 %2100  ;;  %2631 = vmatprep.subr.bf16.mxu1 %v2700_v0 }
 0x2f8   : > { %v2104_v2 = vsel %vm3199_vm2, %v2099_v15, %v2101_v17 }
 0x2f9   : > { %v2204_v7 = vpop.permute.xlu1 %2203  ;;  %v2115_v20 = vsel %vm1265_vm11, %v2104_v2, 0 }
 0x2fb   : > { %2486 = vmatmul.mubr.msk.bf16.vlgmr.msra.gmra.mrb[60].mxu0 %vm1360_vm7, %v2484_v3  ;;  %v2206_v19 = vpop.permute.xlu0 %2205 }
 0x2fc   : > { %2118 = vmatpush1.bf16.msra.mxu0 %v2109_v4  ;;  %2149 = vmatprep.mubr.bf16.mxu0 %v2701_v1  ;;  %v2211_v24 = vsel %vm3201_vm8, %v2204_v7, %v2206_v19 }
 0x2fd   : > { %v2208_v21 = vpop.permute.xlu1 %2207  ;;  %2628 = vmatmul.mubr.msk.bf16.vlgmr.msra.gmra.mrb[60].mxu1 %vm1360_vm7, %v2484_v3  ;;  %v2218_v27 = vsel %vm1265_vm11, %v2211_v24, 0 }
 0x2fe   : > { %v2212_v22 = vsel %vm3200_vm3, %v2206_v19, %v2208_v21  ;;  %2632 = vmatpush3.bf16.msra.mxu1 %v2115_v20  ;;  %2633 = vmatprep.mubr.msk.bf16.mxu1 %vm2702_vm0, %v2700_v0 }
 0x2ff   : > { %2493 = vmatprep.subr.msk.bf16.mxu0 %vm1265_vm11, %v2212_v22  ;;  %v2210_v23 = vpop.permute.xlu0 %2209  ;;  %2637 = vmatprep.subr.bf16.mxu1 %v2700_v0 }
 0x300   : > { %v2213_v26 = vsel %vm3202_vm9, %v2208_v21, %v2210_v23 }
 0x301   : > { %v2224_v28 = vsel %vm1265_vm11, %v2213_v26, 0 }
 0x303   : > { %2490 = vmatmul.mubr.msk.bf16.vlgmr.msra.gmra.mrb[64].mxu0 %vm1360_vm7, %v2488_v25 }
 0x304   : > { %2227 = vmatpush1.bf16.msra.mxu0 %v2218_v27  ;;  %2258 = vmatprep.mubr.bf16.mxu0 %v2701_v1 }
 0x305   : > { %2634 = vmatmul.mubr.msk.bf16.vlgmr.msra.gmra.mrb[64].mxu1 %vm1360_vm7, %v2488_v25 }
 0x306   : > { %2638 = vmatpush3.bf16.msra.mxu1 %v2224_v28  ;;  %2639 = vmatprep.mubr.msk.bf16.mxu1 %vm2702_vm0, %v2700_v0 }
 0x30b   : > { %2494 = vmatmul.mubr.msk.bf16.vlgmr.msra.gmra.mrb[68].mxu0 %vm1360_vm7, %v2492_v29 }
 0x30d   : > { %2640 = vmatmul.mubr.msk.bf16.vlgmr.msra.gmra.mrb[68].mxu1 %vm1360_vm7, %v2492_v29 }
 0x39e   : > { %v1407_v30 = vpop.f32.mrb[36].mxu0 }
 0x39f   : > { %v1409_v31 = vpop.f32.mrb[37].mxu0 }
 0x3a0   : > { %v1448_v32 = vpop.f32.mrb[36].mxu1  ;;  %v1411_v1 = vpop.f32.mrb[38].mxu0 }
 0x3a1   : > { %v2593_v33 = vpop.f32.mrb[37].mxu1  ;;  %v1412_v34 = vpop.f32.mrb[39].mxu0 }
 0x3a2   : > { %v1451_v35 = vpop.f32.mrb[38].mxu1 }
 0x3a3   : > { %v2594_v37 = vpop.f32.mrb[39].mxu1 }
 0x3a6   : > { %v1500_v38 = vpop.f32.mrb[40].mxu0 }
 0x3a7   : > { %v1501_v39 = vadd.f32 %v1500_v38, %v1407_v30  ;;  %v1502_v40 = vpop.f32.mrb[41].mxu0 }
 0x3a8   : > { %v1503_v0 = vadd.f32 %v1502_v40, %v1409_v31  ;;  %v1541_v41 = vpop.f32.mrb[40].mxu1  ;;  %v1504_v42 = vpop.f32.mrb[42].mxu0 }
 0x3a9   : > { %v1542_v43 = vadd.f32 %v1541_v41, %v1448_v32  ;;  %v2599_v44 = vpop.f32.mrb[41].mxu1  ;;  %v1505_v45 = vpop.f32.mrb[43].mxu0 }
 0x3aa   : > { %v1544_v46 = vpop.f32.mrb[42].mxu1 }
 0x3ab   : > { %v2600_v47 = vpop.f32.mrb[43].mxu1 }
 0x3ae   : > { %v1606_v48 = vpop.f32.mrb[44].mxu0 }
 0x3af   : > { %v1653_v49 = vadd.f32 %v1606_v48, %v1501_v39  ;;  %v1608_v50 = vpop.f32.mrb[45].mxu0 }
 0x3b0   : > { %v1654_v51 = vadd.f32 %v1608_v50, %v1503_v0  ;;  %v1647_v52 = vpop.f32.mrb[44].mxu1  ;;  %v1610_v53 = vpop.f32.mrb[46].mxu0 }
 0x3b1   : > { %v1655_v54 = vadd.f32 %v1647_v52, %v1542_v43  ;;  %v2605_v55 = vpop.f32.mrb[45].mxu1  ;;  %v1611_v56 = vpop.f32.mrb[47].mxu0 }
 0x3b2   : > { %v1650_v57 = vpop.f32.mrb[46].mxu1 }
 0x3b3   : > { %v2606_v58 = vpop.f32.mrb[47].mxu1 }
 0x3b6   : > { %v1715_v59 = vpop.f32.mrb[48].mxu0 }
 0x3b7   : > { %v1762_v60 = vadd.f32 %v1715_v59, %v1653_v49  ;;  %v1717_v61 = vpop.f32.mrb[49].mxu0 }
 0x3b8   : > { %v1763_v62 = vadd.f32 %v1717_v61, %v1654_v51  ;;  %v1756_v63 = vpop.f32.mrb[48].mxu1  ;;  %v1719_v5 = vpop.f32.mrb[50].mxu0 }
 0x3b9   : > { %v1764_v6 = vadd.f32 %v1756_v63, %v1655_v54  ;;  %v2611_v8 = vpop.f32.mrb[49].mxu1  ;;  %v1720_v9 = vpop.f32.mrb[51].mxu0 }
 0x3ba   : > { %v1759_v10 = vpop.f32.mrb[50].mxu1  ;;  %v2314_v51 = vpop.permute.xlu1 %2313 }
 0x3bb   : > { %v2612_v11 = vpop.f32.mrb[51].mxu1 }
 0x3be   : > { %v1824_v36 = vpop.f32.mrb[52].mxu0 }
 0x3bf   : > { %v1871_v12 = vadd.f32 %v1824_v36, %v1762_v60  ;;  %v1826_v13 = vpop.f32.mrb[53].mxu0 }
 0x3c0   : > { %v1872_v14 = vadd.f32 %v1826_v13, %v1763_v62  ;;  %v1865_v15 = vpop.f32.mrb[52].mxu1  ;;  %v1828_v16 = vpop.f32.mrb[54].mxu0 }
 0x3c1   : > { %v1873_v17 = vadd.f32 %v1865_v15, %v1764_v6  ;;  %v2617_v18 = vpop.f32.mrb[53].mxu1  ;;  %v1829_v3 = vpop.f32.mrb[55].mxu0 }
 0x3c2   : > { %v1868_v7 = vpop.f32.mrb[54].mxu1  ;;  %v2344_v18 = vpop.permute.xlu1 %2343 }
 0x3c3   : > { %v2618_v2 = vpop.f32.mrb[55].mxu1  ;;  %v2342_v3 = vpop.permute.xlu0 %2341 }
 0x3c6   : > { %v1933_v4 = vpop.f32.mrb[56].mxu0  ;;  %v2348_v7 = vpop.permute.xlu1 %2347 }
 0x3c7   : > { %v1980_v19 = vadd.f32 %v1933_v4, %v1871_v12  ;;  %v1935_v20 = vpop.f32.mrb[57].mxu0  ;;  %v2346_v4 = vpop.permute.xlu0 %2345 }
 0x3c8   : > { %v1981_v21 = vadd.f32 %v1935_v20, %v1872_v14  ;;  %v1974_v22 = vpop.f32.mrb[56].mxu1  ;;  %v1937_v23 = vpop.f32.mrb[58].mxu0 }
 0x3c9   : > { %v1982_v24 = vadd.f32 %v1974_v22, %v1873_v17  ;;  %v2623_v25 = vpop.f32.mrb[57].mxu1  ;;  %v1938_v26 = vpop.f32.mrb[59].mxu0  ;;  %v2350_v22 = vsel %vm698_vm6, %v2342_v3, %v2344_v18 }
 0x3ca   : > { %v1977_v27 = vpop.f32.mrb[58].mxu1 }
 0x3cb   : > { %v2624_v28 = vpop.f32.mrb[59].mxu1  ;;  %v2351_v27 = vsel %vm698_vm6, %v2344_v18, %v2346_v4 }
 0x3ce   : > { %v2042_v29 = vpop.f32.mrb[60].mxu0 }
 0x3cf   : > { %v2089_v30 = vadd.f32 %v2042_v29, %v1980_v19  ;;  %v2044_v31 = vpop.f32.mrb[61].mxu0 }
 0x3d0   : > { %v2090_v32 = vadd.f32 %v2044_v31, %v1981_v21  ;;  %v2083_v1 = vpop.f32.mrb[60].mxu1  ;;  %v2046_v33 = vpop.f32.mrb[62].mxu0 }
 0x3d1   : > { %v2091_v34 = vadd.f32 %v2083_v1, %v1982_v24  ;;  %v2629_v35 = vpop.f32.mrb[61].mxu1  ;;  %v2047_v37 = vpop.f32.mrb[63].mxu0  ;;  %v2352_v24 = vsel %vm698_vm6, %v2346_v4, %v2348_v7 }
 0x3d2   : > { %v2086_v38 = vpop.f32.mrb[62].mxu1 }
 0x3d3   : > { %v2630_v39 = vpop.f32.mrb[63].mxu1 }
 0x3d6   : > { %v2151_v40 = vpop.f32.mrb[64].mxu0 }
 0x3d7   : > { %v2198_v0 = vadd.f32 %v2151_v40, %v2089_v30  ;;  %v2153_v41 = vpop.f32.mrb[65].mxu0 }
 0x3d8   : > { %v2199_v42 = vadd.f32 %v2153_v41, %v2090_v32  ;;  %v2192_v43 = vpop.f32.mrb[64].mxu1  ;;  %v2155_v44 = vpop.f32.mrb[66].mxu0 }
 0x3d9   : > { %v2200_v45 = vadd.f32 %v2192_v43, %v2091_v34  ;;  %v2635_v46 = vpop.f32.mrb[65].mxu1  ;;  %v2156_v47 = vpop.f32.mrb[67].mxu0 }
 0x3da   : > { %v2195_v48 = vpop.f32.mrb[66].mxu1 }
 0x3db   : > { %v2636_v49 = vpop.f32.mrb[67].mxu1 }
 0x3de   : > { %v2260_v50 = vpop.f32.mrb[68].mxu0 }
 0x3df   : > { %v2307_v52 = vadd.f32 %v2260_v50, %v2198_v0  ;;  %v2262_v53 = vpop.f32.mrb[69].mxu0 }
 0x3e0   : > { %v2308_v54 = vadd.f32 %v2262_v53, %v2199_v42  ;;  %v2301_v55 = vpop.f32.mrb[68].mxu1  ;;  %v2264_v56 = vpop.f32.mrb[70].mxu0 }
 0x3e1   : > { %v2316_v57 = vadd.f32 %v2314_v51, %v2307_v52  ;;  %v2309_v58 = vadd.f32 %v2301_v55, %v2200_v45  ;;  %v2641_v59 = vpop.f32.mrb[69].mxu1  ;;  %v2265_v60 = vpop.f32.mrb[71].mxu0 }
 0x3e2   : > { %v2317_v61 = vadd.f32 %v2314_v51, %v2308_v54  ;;  %v2304_v62 = vpop.f32.mrb[70].mxu1 }
 0x3e3   : > { %v2319_v63 = vsub.f32 0.0, %v2316_v57  ;;  %v2318_v5 = vadd.f32 %v2314_v51, %v2309_v58  ;;  %v2642_v6 = vpop.f32.mrb[71].mxu1 }
 0x3e4   : > { %v2320_v8 = vsub.f32 0.0, %v2317_v61 }
 0x3e5   : > { %v2322_v9 = vmul.f32 1.442695, %v2319_v63  ;;  %v2321_v10 = vsub.f32 0.0, %v2318_v5 }
 0x3e6   : > { %v2324_v11 = vmul.f32 1.442695, %v2320_v8 }
 0x3e7   : > { %2680 = vpow2.f32 %v2322_v9  ;;  %v2326_v36 = vmul.f32 1.442695, %v2321_v10 }
 0x3e8   : > { %2682 = vpow2.f32 %v2324_v11 }
 0x3e9   : > { %2684 = vpow2.f32 %v2326_v36 }
 0x3f1   : > { %v2681_v12 = vpop.eup %2680 }
 0x3f2   : > { %v2683_v13 = vpop.eup %2682  ;;  %v2328_v14 = vadd.f32 1.0, %v2681_v12 }
 0x3f3   : > { %v2685_v15 = vpop.eup %2684  ;;  %v2329_v16 = vadd.f32 1.0, %v2683_v13 }
 0x3f4   : > { %2686 = vrcp.f32 %v2328_v14  ;;  %v2330_v17 = vadd.f32 1.0, %v2685_v15 }
 0x3f5   : > { %2688 = vrcp.f32 %v2329_v16 }
 0x3f6   : > { %2690 = vrcp.f32 %v2330_v17 }
 0x3fe   : > { %v2687_v2 = vpop.eup %2686 }
 0x3ff   : > { %v2689_v19 = vpop.eup %2688  ;;  %v2334_v20 = vmul.f32 %v2687_v2, %v2316_v57 }
 0x400   : > { %v2691_v21 = vpop.eup %2690  ;;  %v2335_v23 = vmul.f32 %v2689_v19, %v2317_v61 }
 0x401   : > { %v2336_v25 = vmul.f32 %v2691_v21, %v2318_v5  ;;  %v2356_v26 = vadd.f32 %v2350_v22, %v2334_v20 }
 0x402   : > { %v2357_v28 = vadd.f32 %v2351_v27, %v2335_v23 }
 0x403   : > { %2359 = vst [vmem:[%s251_s28] sm:$0xff] %v2356_v26  ;;  %v2358_v29 = vadd.f32 %v2352_v24, %v2336_v25 }
 0x404   : > { %2360 = vst [vmem:[%s251_s28 + $0x8] sm:$0xff] %v2357_v28 }
 0x405   : > { %2361 = vst [vmem:[%s251_s28 + $0x10] sm:$0xff] %v2358_v29 }
 0x406 PF: > { %s16_s21 = sadd.s32 1, %s2698_s21  }
 0x407   : > { %p13_p4 = scmp.ge.s32.totalorder %s16_s21, 4  }
 0x409   :  { %15 = sbr.rel (!%p13_p4) target bundleno = 1 (0x1), region = 90 }

</bundles_post_ra>
